<compile_context>
chip_gen: v5e
topology: v5e:2x2
jax: 0.10.0
libtpu: 0.0.40
codegen_flags: <defaults>
</compile_context>

<pallas_src>
import functools

import jax
import jax.numpy as jnp
from jax.experimental import pallas as pl
from jax.experimental.pallas import tpu as pltpu


def _round_up(x, m):
    return ((x + m - 1) // m) * m


def _rotated_bbox_loss_kernel(pd_ref, pb_ref, tb_ref, an_ref, wfg_ref,
                              liou_ref, ldfl_ref, *, reg_max):
    """One anchor-tile. All inputs are (channels, TILE): anchors on the lane axis."""
    eps = 1e-7

    wfg = wfg_ref[...]              # (1, T)  = target_scores.sum(-1) * fg_mask
    pb = pb_ref[...]                # (5, T)  predicted xywhr
    tb = tb_ref[...]                # (5, T)  target    xywhr

    # ---------------- probiou (rotated IoU), lane dense ----------------
    def cov(b):
        a = jnp.square(b[2:3, :]) * (1.0 / 12.0)
        bb = jnp.square(b[3:4, :]) * (1.0 / 12.0)
        r = b[4:5, :]
        cos = jnp.cos(r)
        sin = jnp.sin(r)
        cos2 = cos * cos
        sin2 = sin * sin
        return a * cos2 + bb * sin2, a * sin2 + bb * cos2, (a - bb) * cos * sin

    x1 = pb[0:1, :]
    y1 = pb[1:2, :]
    x2 = tb[0:1, :]
    y2 = tb[1:2, :]
    a1, b1, c1 = cov(pb)
    a2, b2, c2 = cov(tb)

    det_sum = (a1 + a2) * (b1 + b2) - jnp.square(c1 + c2)
    inv_denom = pl.reciprocal(det_sum + eps)          # one reciprocal, reused twice
    t1 = ((a1 + a2) * jnp.square(y1 - y2)
          + (b1 + b2) * jnp.square(x1 - x2)) * (inv_denom * 0.25)
    t2 = ((c1 + c2) * (x2 - x1) * (y1 - y2)) * (inv_denom * 0.5)
    det1 = jnp.maximum(a1 * b1 - jnp.square(c1), 0.0)
    det2 = jnp.maximum(a2 * b2 - jnp.square(c2), 0.0)
    t3 = jnp.log(det_sum / (4.0 * jnp.sqrt(det1 * det2) + eps) + eps) * 0.5
    bd = jnp.clip(t1 + t2 + t3, eps, 100.0)
    # hd == 1 - iou, i.e. exactly the per-anchor IoU loss term (no double negation).
    hd = jnp.sqrt(1.0 - jnp.exp(-bd) + eps)           # (1, T)
    iou_part = jnp.sum(jnp.where(wfg > 0.0, hd * wfg, 0.0), keepdims=True)   # (1, 1)

    # ---------------- DFL (distribution focal loss), lane dense ----------------
    # target_ltrb = bbox2dist(anchor_points, xywh2xyxy(target_bboxes[..., :4]), reg_max-1)
    an = an_ref[...]                # (2, T)
    ax = an[0:1, :]
    ay = an[1:2, :]
    cx = tb[0:1, :]
    cy = tb[1:2, :]
    hw = tb[2:3, :] * 0.5
    hh = tb[3:4, :] * 0.5
    hi = float(reg_max) - 1.0 - 0.01
    targets = (
        jnp.clip(ax - (cx - hw), 0.0, hi),   # left
        jnp.clip(ay - (cy - hh), 0.0, hi),   # top
        jnp.clip((cx + hw) - ax, 0.0, hi),   # right
        jnp.clip((cy + hh) - ay, 0.0, hi),   # bottom
    )

    tile = wfg.shape[1]
    bin_idx = jax.lax.broadcasted_iota(jnp.int32, (reg_max, tile), 0)

    dfl_sum = jnp.zeros((1, tile), jnp.float32)
    for s in range(4):
        # (reg_max, T) lane-dense logits for side s; reductions run over sublanes (XLU).
        logits = pd_ref[s * reg_max:(s + 1) * reg_max, :]
        m = jnp.max(logits, axis=0, keepdims=True)
        lse = m + jnp.log(jnp.sum(jnp.exp(logits - m), axis=0, keepdims=True))
        t = targets[s]                                 # (1, T)
        tl = jnp.floor(t)
        wl = (tl + 1.0) - t
        tl_i = tl.astype(jnp.int32)
        g_tl = jnp.sum(jnp.where(bin_idx == tl_i, logits, 0.0), axis=0, keepdims=True)
        g_tr = jnp.sum(jnp.where(bin_idx == (tl_i + 1), logits, 0.0), axis=0, keepdims=True)
        # CE(tl)*wl + CE(tr)*wr == lse - (g_tl*wl + g_tr*(1 - wl))   since wl + wr == 1
        dfl_sum = dfl_sum + lse - (g_tl * wl + g_tr * (1.0 - wl))

    dfl_per_anchor = dfl_sum * 0.25                    # mean over the 4 (l,t,r,b) sides
    dfl_part = jnp.sum(jnp.where(wfg > 0.0, dfl_per_anchor * wfg, 0.0), keepdims=True)

    # Per-tile partial sums, written as one aligned (8, 128) slab per grid step.
    liou_ref[0] = jnp.broadcast_to(iou_part, (8, 128))
    ldfl_ref[0] = jnp.broadcast_to(dfl_part, (8, 128))


def rotated_bbox_loss(pred_dist, pred_bboxes, anchor_points, target_bboxes,
                      target_scores, target_scores_sum, fg_mask,
                      reg_max=16, tile_n=4096):
    """JAX/Pallas equivalent of RotatedBboxLoss.forward (assumes reg_max > 1)."""
    B, A = fg_mask.shape
    N = B * A
    f32 = jnp.float32

    # Anchor-tile size: lane-aligned (multiple of 128), small enough that
    # double-buffered per-tile inputs (~77 ch * 4 B * tile * 2) stay at a few MiB,
    # i.e. comfortably inside scoped VMEM on v5e/v6e and v7x's 64 MiB.
    tile = min(int(tile_n), _round_up(N, 128))
    tile = _round_up(tile, 128)
    n_pad = _round_up(N, tile)
    grid = n_pad // tile

    def to_lanes(x, c):
        # (B, A, c) -> (c, N) lane-dense, zero-padded to n_pad anchors.
        x = x.reshape(N, c).astype(f32).T
        return jnp.pad(x, ((0, 0), (0, n_pad - N)))

    pd_t = to_lanes(pred_dist, 4 * reg_max)                     # (4*reg_max, Np)
    pb_t = to_lanes(pred_bboxes, 5)                             # (5, Np)
    tb_t = to_lanes(target_bboxes, 5)                           # (5, Np)
    # TODO(synk): anchor_points is materialized B times here (8 B/anchor, ~3% of the
    # kernel's HBM bytes); avoiding it needs anchor-aligned tiles + an index_map trick.
    an_t = to_lanes(jnp.broadcast_to(anchor_points[None], (B, A, 2)), 2)   # (2, Np)
    # Pre-reduce target_scores (N, nc) -> per-anchor weight * fg_mask in the wrapper,
    # so the memory-bound kernel never reads the full score tensor.
    wfg = target_scores.astype(f32).sum(-1) * fg_mask.astype(f32)           # (B, A)
    wfg_t = to_lanes(wfg[..., None], 1)                                     # (1, Np)

    kernel = functools.partial(_rotated_bbox_loss_kernel, reg_max=reg_max)

    def row_spec(c):
        return pl.BlockSpec((c, tile), lambda i: (0, i))

    out_spec = pl.BlockSpec((1, 8, 128), lambda i: (i, 0, 0))

    iou_parts, dfl_parts = pl.pallas_call(
        kernel,
        grid=(grid,),
        in_specs=[row_spec(4 * reg_max), row_spec(5), row_spec(5),
                  row_spec(2), row_spec(1)],
        out_specs=(out_spec, out_spec),
        out_shape=(jax.ShapeDtypeStruct((grid, 8, 128), f32),
                   jax.ShapeDtypeStruct((grid, 8, 128), f32)),
        compiler_params=pltpu.CompilerParams(
            dimension_semantics=("parallel",),    # independent tiles: megacore on v7x
            vmem_limit_bytes=32 * 1024 * 1024),
    )(pd_t, pb_t, tb_t, an_t, wfg_t)

    tss = jnp.asarray(target_scores_sum, f32)
    loss_iou = iou_parts[:, 0, 0].sum() / tss
    loss_dfl = dfl_parts[:, 0, 0].sum() / tss
    return loss_iou, loss_dfl


if __name__ == "__main__":
    key = jax.random.PRNGKey(0)
    B, A, NC, REG_MAX = 2, 64, 8, 16

    k = jax.random.split(key, 8)
    pred_dist = jax.random.normal(k[0], (B, A, 4 * REG_MAX), jnp.float32)

    # rotated boxes: (cx, cy, w, h, angle), w/h strictly positive
    pxy = jax.random.uniform(k[1], (B, A, 2), jnp.float32, 2.0, 14.0)
    pwh = jax.random.uniform(k[2], (B, A, 2), jnp.float32, 1.0, 6.0)
    pr = jax.random.uniform(k[3], (B, A, 1), jnp.float32, -0.6, 0.6)
    pred_bboxes = jnp.concatenate([pxy, pwh, pr], axis=-1)

    txy = jax.random.uniform(k[4], (B, A, 2), jnp.float32, 2.0, 14.0)
    twh = jax.random.uniform(k[5], (B, A, 2), jnp.float32, 1.0, 6.0)
    tr = jax.random.uniform(k[6], (B, A, 1), jnp.float32, -0.6, 0.6)
    target_bboxes = jnp.concatenate([txy, twh, tr], axis=-1)

    # anchor points on an 8x8 grid (A = 64), centered at +0.5
    gy, gx = jnp.meshgrid(jnp.arange(8, dtype=jnp.float32) + 0.5,
                          jnp.arange(8, dtype=jnp.float32) + 0.5, indexing="ij")
    anchor_points = jnp.stack([gx.reshape(-1), gy.reshape(-1)], axis=-1)  # (A, 2)

    target_scores = jax.random.uniform(k[7], (B, A, NC), jnp.float32)
    fg_mask = (jax.random.uniform(jax.random.PRNGKey(123), (B, A)) > 0.5)
    target_scores_sum = jnp.maximum(target_scores.sum(), 1.0)

    loss_iou, loss_dfl = rotated_bbox_loss(
        pred_dist, pred_bboxes, anchor_points, target_bboxes,
        target_scores, target_scores_sum, fg_mask, reg_max=REG_MAX)
    jax.block_until_ready((loss_iou, loss_dfl))
    print("KERNEL_OK")
</pallas_src>

<mosaic_0001>
module attributes {stable_mosaic.version = 11 : i64} {
  func.func @_rotated_bbox_loss_kernel(%arg0: i32, %arg1: memref<64x128xf32, #tpu.memory_space<vmem>>, %arg2: memref<5x128xf32, #tpu.memory_space<vmem>>, %arg3: memref<5x128xf32, #tpu.memory_space<vmem>>, %arg4: memref<2x128xf32, #tpu.memory_space<vmem>>, %arg5: memref<1x128xf32, #tpu.memory_space<vmem>>, %arg6: memref<1x8x128xf32, #tpu.memory_space<vmem>>, %arg7: memref<1x8x128xf32, #tpu.memory_space<vmem>>) attributes {dimension_semantics = [#tpu.dimension_semantics<parallel>], iteration_bounds = array<i64: 1>, scalar_prefetch = 0 : i64, scratch_operands = 0 : i64, tpu.core_type = #tpu.core_type<tc>, window_params = [{transform_indices = @transform_0, window_bounds = array<i64: 64, 128>}, {transform_indices = @transform_1, window_bounds = array<i64: 5, 128>}, {transform_indices = @transform_2, window_bounds = array<i64: 5, 128>}, {transform_indices = @transform_3, window_bounds = array<i64: 2, 128>}, {transform_indices = @transform_4, window_bounds = array<i64: 1, 128>}, {transform_indices = @transform_5, window_bounds = array<i64: 1, 8, 128>}, {transform_indices = @transform_6, window_bounds = array<i64: 1, 8, 128>}]} {
    %c0 = arith.constant 0 : index
    %c0_0 = arith.constant 0 : index
    %0 = vector.load %arg5[%c0, %c0_0] : memref<1x128xf32, #tpu.memory_space<vmem>>, vector<1x128xf32>
    %c0_1 = arith.constant 0 : index
    %c0_2 = arith.constant 0 : index
    %1 = vector.load %arg2[%c0_1, %c0_2] : memref<5x128xf32, #tpu.memory_space<vmem>>, vector<5x128xf32>
    %c0_3 = arith.constant 0 : index
    %c0_4 = arith.constant 0 : index
    %2 = vector.load %arg3[%c0_3, %c0_4] : memref<5x128xf32, #tpu.memory_space<vmem>>, vector<5x128xf32>
    %3 = vector.extract_strided_slice %1 {offsets = [0, 0], sizes = [1, 128], strides = [1, 1]} : vector<5x128xf32> to vector<1x128xf32>
    %4 = vector.extract_strided_slice %1 {offsets = [1, 0], sizes = [1, 128], strides = [1, 1]} : vector<5x128xf32> to vector<1x128xf32>
    %5 = vector.extract_strided_slice %2 {offsets = [0, 0], sizes = [1, 128], strides = [1, 1]} : vector<5x128xf32> to vector<1x128xf32>
    %6 = vector.extract_strided_slice %2 {offsets = [1, 0], sizes = [1, 128], strides = [1, 1]} : vector<5x128xf32> to vector<1x128xf32>
    %7 = vector.extract_strided_slice %1 {offsets = [2, 0], sizes = [1, 128], strides = [1, 1]} : vector<5x128xf32> to vector<1x128xf32>
    %8 = arith.mulf %7, %7 : vector<1x128xf32>
    %cst = arith.constant 0.0833333358 : f32
    %9 = vector.broadcast %cst : f32 to vector<1x128xf32>
    %10 = arith.mulf %8, %9 : vector<1x128xf32>
    %11 = vector.extract_strided_slice %1 {offsets = [3, 0], sizes = [1, 128], strides = [1, 1]} : vector<5x128xf32> to vector<1x128xf32>
    %12 = arith.mulf %11, %11 : vector<1x128xf32>
    %cst_5 = arith.constant 0.0833333358 : f32
    %13 = vector.broadcast %cst_5 : f32 to vector<1x128xf32>
    %14 = arith.mulf %12, %13 : vector<1x128xf32>
    %15 = vector.extract_strided_slice %1 {offsets = [4, 0], sizes = [1, 128], strides = [1, 1]} : vector<5x128xf32> to vector<1x128xf32>
    %16 = math.cos %15 : vector<1x128xf32>
    %17 = math.sin %15 : vector<1x128xf32>
    %18 = arith.mulf %16, %16 : vector<1x128xf32>
    %19 = arith.mulf %17, %17 : vector<1x128xf32>
    %20 = arith.mulf %10, %18 : vector<1x128xf32>
    %21 = arith.mulf %14, %19 : vector<1x128xf32>
    %22 = arith.addf %20, %21 : vector<1x128xf32>
    %23 = arith.mulf %10, %19 : vector<1x128xf32>
    %24 = arith.mulf %14, %18 : vector<1x128xf32>
    %25 = arith.addf %23, %24 : vector<1x128xf32>
    %26 = arith.subf %10, %14 : vector<1x128xf32>
    %27 = arith.mulf %26, %16 : vector<1x128xf32>
    %28 = arith.mulf %27, %17 : vector<1x128xf32>
    %29 = vector.extract_strided_slice %2 {offsets = [2, 0], sizes = [1, 128], strides = [1, 1]} : vector<5x128xf32> to vector<1x128xf32>
    %30 = arith.mulf %29, %29 : vector<1x128xf32>
    %cst_6 = arith.constant 0.0833333358 : f32
    %31 = vector.broadcast %cst_6 : f32 to vector<1x128xf32>
    %32 = arith.mulf %30, %31 : vector<1x128xf32>
    %33 = vector.extract_strided_slice %2 {offsets = [3, 0], sizes = [1, 128], strides = [1, 1]} : vector<5x128xf32> to vector<1x128xf32>
    %34 = arith.mulf %33, %33 : vector<1x128xf32>
    %cst_7 = arith.constant 0.0833333358 : f32
    %35 = vector.broadcast %cst_7 : f32 to vector<1x128xf32>
    %36 = arith.mulf %34, %35 : vector<1x128xf32>
    %37 = vector.extract_strided_slice %2 {offsets = [4, 0], sizes = [1, 128], strides = [1, 1]} : vector<5x128xf32> to vector<1x128xf32>
    %38 = math.cos %37 : vector<1x128xf32>
    %39 = math.sin %37 : vector<1x128xf32>
    %40 = arith.mulf %38, %38 : vector<1x128xf32>
    %41 = arith.mulf %39, %39 : vector<1x128xf32>
    %42 = arith.mulf %32, %40 : vector<1x128xf32>
    %43 = arith.mulf %36, %41 : vector<1x128xf32>
    %44 = arith.addf %42, %43 : vector<1x128xf32>
    %45 = arith.mulf %32, %41 : vector<1x128xf32>
    %46 = arith.mulf %36, %40 : vector<1x128xf32>
    %47 = arith.addf %45, %46 : vector<1x128xf32>
    %48 = arith.subf %32, %36 : vector<1x128xf32>
    %49 = arith.mulf %48, %38 : vector<1x128xf32>
    %50 = arith.mulf %49, %39 : vector<1x128xf32>
    %51 = arith.addf %22, %44 : vector<1x128xf32>
    %52 = arith.addf %25, %47 : vector<1x128xf32>
    %53 = arith.mulf %51, %52 : vector<1x128xf32>
    %54 = arith.addf %28, %50 : vector<1x128xf32>
    %55 = arith.mulf %54, %54 : vector<1x128xf32>
    %56 = arith.subf %53, %55 : vector<1x128xf32>
    %cst_8 = arith.constant 1.000000e-07 : f32
    %57 = vector.broadcast %cst_8 : f32 to vector<1x128xf32>
    %58 = arith.addf %56, %57 : vector<1x128xf32>
    %59 = tpu.reciprocal %58 : vector<1x128xf32> -> vector<1x128xf32>
    %60 = arith.addf %22, %44 : vector<1x128xf32>
    %61 = arith.subf %4, %6 : vector<1x128xf32>
    %62 = arith.mulf %61, %61 : vector<1x128xf32>
    %63 = arith.mulf %60, %62 : vector<1x128xf32>
    %64 = arith.addf %25, %47 : vector<1x128xf32>
    %65 = arith.subf %3, %5 : vector<1x128xf32>
    %66 = arith.mulf %65, %65 : vector<1x128xf32>
    %67 = arith.mulf %64, %66 : vector<1x128xf32>
    %68 = arith.addf %63, %67 : vector<1x128xf32>
    %cst_9 = arith.constant 2.500000e-01 : f32
    %69 = vector.broadcast %cst_9 : f32 to vector<1x128xf32>
    %70 = arith.mulf %59, %69 : vector<1x128xf32>
    %71 = arith.mulf %68, %70 : vector<1x128xf32>
    %72 = arith.addf %28, %50 : vector<1x128xf32>
    %73 = arith.subf %5, %3 : vector<1x128xf32>
    %74 = arith.mulf %72, %73 : vector<1x128xf32>
    %75 = arith.subf %4, %6 : vector<1x128xf32>
    %76 = arith.mulf %74, %75 : vector<1x128xf32>
    %cst_10 = arith.constant 5.000000e-01 : f32
    %77 = vector.broadcast %cst_10 : f32 to vector<1x128xf32>
    %78 = arith.mulf %59, %77 : vector<1x128xf32>
    %79 = arith.mulf %76, %78 : vector<1x128xf32>
    %80 = arith.mulf %22, %25 : vector<1x128xf32>
    %81 = arith.mulf %28, %28 : vector<1x128xf32>
    %82 = arith.subf %80, %81 : vector<1x128xf32>
    %cst_11 = arith.constant 0.000000e+00 : f32
    %83 = vector.broadcast %cst_11 : f32 to vector<1x128xf32>
    %84 = arith.maximumf %82, %83 : vector<1x128xf32>
    %85 = arith.mulf %44, %47 : vector<1x128xf32>
    %86 = arith.mulf %50, %50 : vector<1x128xf32>
    %87 = arith.subf %85, %86 : vector<1x128xf32>
    %cst_12 = arith.constant 0.000000e+00 : f32
    %88 = vector.broadcast %cst_12 : f32 to vector<1x128xf32>
    %89 = arith.maximumf %87, %88 : vector<1x128xf32>
    %90 = arith.mulf %84, %89 : vector<1x128xf32>
    %91 = math.sqrt %90 : vector<1x128xf32>
    %cst_13 = arith.constant 4.000000e+00 : f32
    %92 = vector.broadcast %cst_13 : f32 to vector<1x128xf32>
    %93 = arith.mulf %92, %91 : vector<1x128xf32>
    %cst_14 = arith.constant 1.000000e-07 : f32
    %94 = vector.broadcast %cst_14 : f32 to vector<1x128xf32>
    %95 = arith.addf %93, %94 : vector<1x128xf32>
    %96 = arith.divf %56, %95 : vector<1x128xf32>
    %cst_15 = arith.constant 1.000000e-07 : f32
    %97 = vector.broadcast %cst_15 : f32 to vector<1x128xf32>
    %98 = arith.addf %96, %97 : vector<1x128xf32>
    %99 = math.log %98 : vector<1x128xf32>
    %cst_16 = arith.constant 5.000000e-01 : f32
    %100 = vector.broadcast %cst_16 : f32 to vector<1x128xf32>
    %101 = arith.mulf %99, %100 : vector<1x128xf32>
    %102 = arith.addf %71, %79 : vector<1x128xf32>
    %103 = arith.addf %102, %101 : vector<1x128xf32>
    %cst_17 = arith.constant 1.000000e-07 : f32
    %cst_18 = arith.constant 1.000000e+02 : f32
    %104 = vector.broadcast %cst_17 : f32 to vector<1x128xf32>
    %105 = arith.maximumf %104, %103 : vector<1x128xf32>
    %106 = vector.broadcast %cst_18 : f32 to vector<1x128xf32>
    %107 = arith.minimumf %106, %105 : vector<1x128xf32>
    %cst_19 = arith.constant 0.000000e+00 : f32
    %108 = vector.broadcast %cst_19 : f32 to vector<1x128xf32>
    %109 = arith.subf %108, %107 : vector<1x128xf32>
    %110 = math.exp %109 : vector<1x128xf32>
    %cst_20 = arith.constant 1.000000e+00 : f32
    %111 = vector.broadcast %cst_20 : f32 to vector<1x128xf32>
    %112 = arith.subf %111, %110 : vector<1x128xf32>
    %cst_21 = arith.constant 1.000000e-07 : f32
    %113 = vector.broadcast %cst_21 : f32 to vector<1x128xf32>
    %114 = arith.addf %112, %113 : vector<1x128xf32>
    %115 = math.sqrt %114 : vector<1x128xf32>
    %cst_22 = arith.constant 0.000000e+00 : f32
    %116 = vector.broadcast %cst_22 : f32 to vector<1x128xf32>
    %117 = arith.cmpf ogt, %0, %116 : vector<1x128xf32>
    %118 = arith.mulf %115, %0 : vector<1x128xf32>
    %cst_23 = arith.constant 0.000000e+00 : f32
    %119 = vector.broadcast %cst_23 : f32 to vector<1x128xf32>
    %120 = arith.select %117, %118, %119 : vector<1x128xi1>, vector<1x128xf32>
    %121 = vector.shape_cast %120 : vector<1x128xf32> to vector<1x1x128xf32>
    %cst_24 = arith.constant dense<0.000000e+00> : vector<1xf32>
    %122 = vector.multi_reduction <add>, %121, %cst_24 [1, 2] : vector<1x1x128xf32> to vector<1xf32>
    %123 = vector.shape_cast %122 : vector<1xf32> to vector<1x1x1xf32>
    %124 = vector.extract %123[0, 0, 0] : f32 from vector<1x1x1xf32>
    %125 = vector.broadcast %124 : f32 to vector<1x1xf32>
    %c0_25 = arith.constant 0 : index
    %c0_26 = arith.constant 0 : index
    %126 = vector.load %arg4[%c0_25, %c0_26] : memref<2x128xf32, #tpu.memory_space<vmem>>, vector<2x128xf32>
    %127 = vector.extract_strided_slice %126 {offsets = [0, 0], sizes = [1, 128], strides = [1, 1]} : vector<2x128xf32> to vector<1x128xf32>
    %128 = vector.extract_strided_slice %126 {offsets = [1, 0], sizes = [1, 128], strides = [1, 1]} : vector<2x128xf32> to vector<1x128xf32>
    %129 = vector.extract_strided_slice %2 {offsets = [0, 0], sizes = [1, 128], strides = [1, 1]} : vector<5x128xf32> to vector<1x128xf32>
    %130 = vector.extract_strided_slice %2 {offsets = [1, 0], sizes = [1, 128], strides = [1, 1]} : vector<5x128xf32> to vector<1x128xf32>
    %131 = vector.extract_strided_slice %2 {offsets = [2, 0], sizes = [1, 128], strides = [1, 1]} : vector<5x128xf32> to vector<1x128xf32>
    %cst_27 = arith.constant 5.000000e-01 : f32
    %132 = vector.broadcast %cst_27 : f32 to vector<1x128xf32>
    %133 = arith.mulf %131, %132 : vector<1x128xf32>
    %134 = vector.extract_strided_slice %2 {offsets = [3, 0], sizes = [1, 128], strides = [1, 1]} : vector<5x128xf32> to vector<1x128xf32>
    %cst_28 = arith.constant 5.000000e-01 : f32
    %135 = vector.broadcast %cst_28 : f32 to vector<1x128xf32>
    %136 = arith.mulf %134, %135 : vector<1x128xf32>
    %137 = arith.subf %129, %133 : vector<1x128xf32>
    %138 = arith.subf %127, %137 : vector<1x128xf32>
    %cst_29 = arith.constant 0.000000e+00 : f32
    %cst_30 = arith.constant 1.499000e+01 : f32
    %139 = vector.broadcast %cst_29 : f32 to vector<1x128xf32>
    %140 = arith.maximumf %139, %138 : vector<1x128xf32>
    %141 = vector.broadcast %cst_30 : f32 to vector<1x128xf32>
    %142 = arith.minimumf %141, %140 : vector<1x128xf32>
    %143 = arith.subf %130, %136 : vector<1x128xf32>
    %144 = arith.subf %128, %143 : vector<1x128xf32>
    %cst_31 = arith.constant 0.000000e+00 : f32
    %cst_32 = arith.constant 1.499000e+01 : f32
    %145 = vector.broadcast %cst_31 : f32 to vector<1x128xf32>
    %146 = arith.maximumf %145, %144 : vector<1x128xf32>
    %147 = vector.broadcast %cst_32 : f32 to vector<1x128xf32>
    %148 = arith.minimumf %147, %146 : vector<1x128xf32>
    %149 = arith.addf %129, %133 : vector<1x128xf32>
    %150 = arith.subf %149, %127 : vector<1x128xf32>
    %cst_33 = arith.constant 0.000000e+00 : f32
    %cst_34 = arith.constant 1.499000e+01 : f32
    %151 = vector.broadcast %cst_33 : f32 to vector<1x128xf32>
    %152 = arith.maximumf %151, %150 : vector<1x128xf32>
    %153 = vector.broadcast %cst_34 : f32 to vector<1x128xf32>
    %154 = arith.minimumf %153, %152 : vector<1x128xf32>
    %155 = arith.addf %130, %136 : vector<1x128xf32>
    %156 = arith.subf %155, %128 : vector<1x128xf32>
    %cst_35 = arith.constant 0.000000e+00 : f32
    %cst_36 = arith.constant 1.499000e+01 : f32
    %157 = vector.broadcast %cst_35 : f32 to vector<1x128xf32>
    %158 = arith.maximumf %157, %156 : vector<1x128xf32>
    %159 = vector.broadcast %cst_36 : f32 to vector<1x128xf32>
    %160 = arith.minimumf %159, %158 : vector<1x128xf32>
    %161 = tpu.iota {dimensions = array<i32: 0>} : vector<16x128xi32>
    %cst_37 = arith.constant 0.000000e+00 : f32
    %162 = vector.broadcast %cst_37 : f32 to vector<1x128xf32>
    %c0_38 = arith.constant 0 : index
    %c0_39 = arith.constant 0 : index
    %163 = vector.load %arg1[%c0_38, %c0_39] : memref<64x128xf32, #tpu.memory_space<vmem>>, vector<16x128xf32>
    %cst_40 = arith.constant dense<0xFF800000> : vector<128xf32>
    %164 = vector.multi_reduction <maximumf>, %163, %cst_40 [0] : vector<16x128xf32> to vector<128xf32>
    %165 = vector.shape_cast %164 : vector<128xf32> to vector<1x128xf32>
    %166 = vector.broadcast %165 : vector<1x128xf32> to vector<16x128xf32>
    %167 = arith.subf %163, %166 : vector<16x128xf32>
    %168 = math.exp %167 : vector<16x128xf32>
    %cst_41 = arith.constant dense<0.000000e+00> : vector<128xf32>
    %169 = vector.multi_reduction <add>, %168, %cst_41 [0] : vector<16x128xf32> to vector<128xf32>
    %170 = vector.shape_cast %169 : vector<128xf32> to vector<1x128xf32>
    %171 = math.log %170 : vector<1x128xf32>
    %172 = arith.addf %165, %171 : vector<1x128xf32>
    %173 = math.floor %142 : vector<1x128xf32>
    %cst_42 = arith.constant 1.000000e+00 : f32
    %174 = vector.broadcast %cst_42 : f32 to vector<1x128xf32>
    %175 = arith.addf %173, %174 : vector<1x128xf32>
    %176 = arith.subf %175, %142 : vector<1x128xf32>
    %177 = arith.fptosi %173 : vector<1x128xf32> to vector<1x128xi32>
    %178 = vector.broadcast %177 : vector<1x128xi32> to vector<16x128xi32>
    %179 = arith.cmpi eq, %161, %178 : vector<16x128xi32>
    %cst_43 = arith.constant 0.000000e+00 : f32
    %180 = vector.broadcast %cst_43 : f32 to vector<16x128xf32>
    %181 = arith.select %179, %163, %180 : vector<16x128xi1>, vector<16x128xf32>
    %cst_44 = arith.constant dense<0.000000e+00> : vector<128xf32>
    %182 = vector.multi_reduction <add>, %181, %cst_44 [0] : vector<16x128xf32> to vector<128xf32>
    %183 = vector.shape_cast %182 : vector<128xf32> to vector<1x128xf32>
    %c1_i32 = arith.constant 1 : i32
    %184 = vector.broadcast %c1_i32 : i32 to vector<1x128xi32>
    %185 = arith.addi %177, %184 : vector<1x128xi32>
    %186 = vector.broadcast %185 : vector<1x128xi32> to vector<16x128xi32>
    %187 = arith.cmpi eq, %161, %186 : vector<16x128xi32>
    %cst_45 = arith.constant 0.000000e+00 : f32
    %188 = vector.broadcast %cst_45 : f32 to vector<16x128xf32>
    %189 = arith.select %187, %163, %188 : vector<16x128xi1>, vector<16x128xf32>
    %cst_46 = arith.constant dense<0.000000e+00> : vector<128xf32>
    %190 = vector.multi_reduction <add>, %189, %cst_46 [0] : vector<16x128xf32> to vector<128xf32>
    %191 = vector.shape_cast %190 : vector<128xf32> to vector<1x128xf32>
    %192 = arith.addf %162, %172 : vector<1x128xf32>
    %193 = arith.mulf %183, %176 : vector<1x128xf32>
    %cst_47 = arith.constant 1.000000e+00 : f32
    %194 = vector.broadcast %cst_47 : f32 to vector<1x128xf32>
    %195 = arith.subf %194, %176 : vector<1x128xf32>
    %196 = arith.mulf %191, %195 : vector<1x128xf32>
    %197 = arith.addf %193, %196 : vector<1x128xf32>
    %198 = arith.subf %192, %197 : vector<1x128xf32>
    %c16 = arith.constant 16 : index
    %c0_48 = arith.constant 0 : index
    %199 = vector.load %arg1[%c16, %c0_48] : memref<64x128xf32, #tpu.memory_space<vmem>>, vector<16x128xf32>
    %cst_49 = arith.constant dense<0xFF800000> : vector<128xf32>
    %200 = vector.multi_reduction <maximumf>, %199, %cst_49 [0] : vector<16x128xf32> to vector<128xf32>
    %201 = vector.shape_cast %200 : vector<128xf32> to vector<1x128xf32>
    %202 = vector.broadcast %201 : vector<1x128xf32> to vector<16x128xf32>
    %203 = arith.subf %199, %202 : vector<16x128xf32>
    %204 = math.exp %203 : vector<16x128xf32>
    %cst_50 = arith.constant dense<0.000000e+00> : vector<128xf32>
    %205 = vector.multi_reduction <add>, %204, %cst_50 [0] : vector<16x128xf32> to vector<128xf32>
    %206 = vector.shape_cast %205 : vector<128xf32> to vector<1x128xf32>
    %207 = math.log %206 : vector<1x128xf32>
    %208 = arith.addf %201, %207 : vector<1x128xf32>
    %209 = math.floor %148 : vector<1x128xf32>
    %cst_51 = arith.constant 1.000000e+00 : f32
    %210 = vector.broadcast %cst_51 : f32 to vector<1x128xf32>
    %211 = arith.addf %209, %210 : vector<1x128xf32>
    %212 = arith.subf %211, %148 : vector<1x128xf32>
    %213 = arith.fptosi %209 : vector<1x128xf32> to vector<1x128xi32>
    %214 = vector.broadcast %213 : vector<1x128xi32> to vector<16x128xi32>
    %215 = arith.cmpi eq, %161, %214 : vector<16x128xi32>
    %cst_52 = arith.constant 0.000000e+00 : f32
    %216 = vector.broadcast %cst_52 : f32 to vector<16x128xf32>
    %217 = arith.select %215, %199, %216 : vector<16x128xi1>, vector<16x128xf32>
    %cst_53 = arith.constant dense<0.000000e+00> : vector<128xf32>
    %218 = vector.multi_reduction <add>, %217, %cst_53 [0] : vector<16x128xf32> to vector<128xf32>
    %219 = vector.shape_cast %218 : vector<128xf32> to vector<1x128xf32>
    %c1_i32_54 = arith.constant 1 : i32
    %220 = vector.broadcast %c1_i32_54 : i32 to vector<1x128xi32>
    %221 = arith.addi %213, %220 : vector<1x128xi32>
    %222 = vector.broadcast %221 : vector<1x128xi32> to vector<16x128xi32>
    %223 = arith.cmpi eq, %161, %222 : vector<16x128xi32>
    %cst_55 = arith.constant 0.000000e+00 : f32
    %224 = vector.broadcast %cst_55 : f32 to vector<16x128xf32>
    %225 = arith.select %223, %199, %224 : vector<16x128xi1>, vector<16x128xf32>
    %cst_56 = arith.constant dense<0.000000e+00> : vector<128xf32>
    %226 = vector.multi_reduction <add>, %225, %cst_56 [0] : vector<16x128xf32> to vector<128xf32>
    %227 = vector.shape_cast %226 : vector<128xf32> to vector<1x128xf32>
    %228 = arith.addf %198, %208 : vector<1x128xf32>
    %229 = arith.mulf %219, %212 : vector<1x128xf32>
    %cst_57 = arith.constant 1.000000e+00 : f32
    %230 = vector.broadcast %cst_57 : f32 to vector<1x128xf32>
    %231 = arith.subf %230, %212 : vector<1x128xf32>
    %232 = arith.mulf %227, %231 : vector<1x128xf32>
    %233 = arith.addf %229, %232 : vector<1x128xf32>
    %234 = arith.subf %228, %233 : vector<1x128xf32>
    %c32 = arith.constant 32 : index
    %c0_58 = arith.constant 0 : index
    %235 = vector.load %arg1[%c32, %c0_58] : memref<64x128xf32, #tpu.memory_space<vmem>>, vector<16x128xf32>
    %cst_59 = arith.constant dense<0xFF800000> : vector<128xf32>
    %236 = vector.multi_reduction <maximumf>, %235, %cst_59 [0] : vector<16x128xf32> to vector<128xf32>
    %237 = vector.shape_cast %236 : vector<128xf32> to vector<1x128xf32>
    %238 = vector.broadcast %237 : vector<1x128xf32> to vector<16x128xf32>
    %239 = arith.subf %235, %238 : vector<16x128xf32>
    %240 = math.exp %239 : vector<16x128xf32>
    %cst_60 = arith.constant dense<0.000000e+00> : vector<128xf32>
    %241 = vector.multi_reduction <add>, %240, %cst_60 [0] : vector<16x128xf32> to vector<128xf32>
    %242 = vector.shape_cast %241 : vector<128xf32> to vector<1x128xf32>
    %243 = math.log %242 : vector<1x128xf32>
    %244 = arith.addf %237, %243 : vector<1x128xf32>
    %245 = math.floor %154 : vector<1x128xf32>
    %cst_61 = arith.constant 1.000000e+00 : f32
    %246 = vector.broadcast %cst_61 : f32 to vector<1x128xf32>
    %247 = arith.addf %245, %246 : vector<1x128xf32>
    %248 = arith.subf %247, %154 : vector<1x128xf32>
    %249 = arith.fptosi %245 : vector<1x128xf32> to vector<1x128xi32>
    %250 = vector.broadcast %249 : vector<1x128xi32> to vector<16x128xi32>
    %251 = arith.cmpi eq, %161, %250 : vector<16x128xi32>
    %cst_62 = arith.constant 0.000000e+00 : f32
    %252 = vector.broadcast %cst_62 : f32 to vector<16x128xf32>
    %253 = arith.select %251, %235, %252 : vector<16x128xi1>, vector<16x128xf32>
    %cst_63 = arith.constant dense<0.000000e+00> : vector<128xf32>
    %254 = vector.multi_reduction <add>, %253, %cst_63 [0] : vector<16x128xf32> to vector<128xf32>
    %255 = vector.shape_cast %254 : vector<128xf32> to vector<1x128xf32>
    %c1_i32_64 = arith.constant 1 : i32
    %256 = vector.broadcast %c1_i32_64 : i32 to vector<1x128xi32>
    %257 = arith.addi %249, %256 : vector<1x128xi32>
    %258 = vector.broadcast %257 : vector<1x128xi32> to vector<16x128xi32>
    %259 = arith.cmpi eq, %161, %258 : vector<16x128xi32>
    %cst_65 = arith.constant 0.000000e+00 : f32
    %260 = vector.broadcast %cst_65 : f32 to vector<16x128xf32>
    %261 = arith.select %259, %235, %260 : vector<16x128xi1>, vector<16x128xf32>
    %cst_66 = arith.constant dense<0.000000e+00> : vector<128xf32>
    %262 = vector.multi_reduction <add>, %261, %cst_66 [0] : vector<16x128xf32> to vector<128xf32>
    %263 = vector.shape_cast %262 : vector<128xf32> to vector<1x128xf32>
    %264 = arith.addf %234, %244 : vector<1x128xf32>
    %265 = arith.mulf %255, %248 : vector<1x128xf32>
    %cst_67 = arith.constant 1.000000e+00 : f32
    %266 = vector.broadcast %cst_67 : f32 to vector<1x128xf32>
    %267 = arith.subf %266, %248 : vector<1x128xf32>
    %268 = arith.mulf %263, %267 : vector<1x128xf32>
    %269 = arith.addf %265, %268 : vector<1x128xf32>
    %270 = arith.subf %264, %269 : vector<1x128xf32>
    %c48 = arith.constant 48 : index
    %c0_68 = arith.constant 0 : index
    %271 = vector.load %arg1[%c48, %c0_68] : memref<64x128xf32, #tpu.memory_space<vmem>>, vector<16x128xf32>
    %cst_69 = arith.constant dense<0xFF800000> : vector<128xf32>
    %272 = vector.multi_reduction <maximumf>, %271, %cst_69 [0] : vector<16x128xf32> to vector<128xf32>
    %273 = vector.shape_cast %272 : vector<128xf32> to vector<1x128xf32>
    %274 = vector.broadcast %273 : vector<1x128xf32> to vector<16x128xf32>
    %275 = arith.subf %271, %274 : vector<16x128xf32>
    %276 = math.exp %275 : vector<16x128xf32>
    %cst_70 = arith.constant dense<0.000000e+00> : vector<128xf32>
    %277 = vector.multi_reduction <add>, %276, %cst_70 [0] : vector<16x128xf32> to vector<128xf32>
    %278 = vector.shape_cast %277 : vector<128xf32> to vector<1x128xf32>
    %279 = math.log %278 : vector<1x128xf32>
    %280 = arith.addf %273, %279 : vector<1x128xf32>
    %281 = math.floor %160 : vector<1x128xf32>
    %cst_71 = arith.constant 1.000000e+00 : f32
    %282 = vector.broadcast %cst_71 : f32 to vector<1x128xf32>
    %283 = arith.addf %281, %282 : vector<1x128xf32>
    %284 = arith.subf %283, %160 : vector<1x128xf32>
    %285 = arith.fptosi %281 : vector<1x128xf32> to vector<1x128xi32>
    %286 = vector.broadcast %285 : vector<1x128xi32> to vector<16x128xi32>
    %287 = arith.cmpi eq, %161, %286 : vector<16x128xi32>
    %cst_72 = arith.constant 0.000000e+00 : f32
    %288 = vector.broadcast %cst_72 : f32 to vector<16x128xf32>
    %289 = arith.select %287, %271, %288 : vector<16x128xi1>, vector<16x128xf32>
    %cst_73 = arith.constant dense<0.000000e+00> : vector<128xf32>
    %290 = vector.multi_reduction <add>, %289, %cst_73 [0] : vector<16x128xf32> to vector<128xf32>
    %291 = vector.shape_cast %290 : vector<128xf32> to vector<1x128xf32>
    %c1_i32_74 = arith.constant 1 : i32
    %292 = vector.broadcast %c1_i32_74 : i32 to vector<1x128xi32>
    %293 = arith.addi %285, %292 : vector<1x128xi32>
    %294 = vector.broadcast %293 : vector<1x128xi32> to vector<16x128xi32>
    %295 = arith.cmpi eq, %161, %294 : vector<16x128xi32>
    %cst_75 = arith.constant 0.000000e+00 : f32
    %296 = vector.broadcast %cst_75 : f32 to vector<16x128xf32>
    %297 = arith.select %295, %271, %296 : vector<16x128xi1>, vector<16x128xf32>
    %cst_76 = arith.constant dense<0.000000e+00> : vector<128xf32>
    %298 = vector.multi_reduction <add>, %297, %cst_76 [0] : vector<16x128xf32> to vector<128xf32>
    %299 = vector.shape_cast %298 : vector<128xf32> to vector<1x128xf32>
    %300 = arith.addf %270, %280 : vector<1x128xf32>
    %301 = arith.mulf %291, %284 : vector<1x128xf32>
    %cst_77 = arith.constant 1.000000e+00 : f32
    %302 = vector.broadcast %cst_77 : f32 to vector<1x128xf32>
    %303 = arith.subf %302, %284 : vector<1x128xf32>
    %304 = arith.mulf %299, %303 : vector<1x128xf32>
    %305 = arith.addf %301, %304 : vector<1x128xf32>
    %306 = arith.subf %300, %305 : vector<1x128xf32>
    %cst_78 = arith.constant 2.500000e-01 : f32
    %307 = vector.broadcast %cst_78 : f32 to vector<1x128xf32>
    %308 = arith.mulf %306, %307 : vector<1x128xf32>
    %cst_79 = arith.constant 0.000000e+00 : f32
    %309 = vector.broadcast %cst_79 : f32 to vector<1x128xf32>
    %310 = arith.cmpf ogt, %0, %309 : vector<1x128xf32>
    %311 = arith.mulf %308, %0 : vector<1x128xf32>
    %cst_80 = arith.constant 0.000000e+00 : f32
    %312 = vector.broadcast %cst_80 : f32 to vector<1x128xf32>
    %313 = arith.select %310, %311, %312 : vector<1x128xi1>, vector<1x128xf32>
    %314 = vector.shape_cast %313 : vector<1x128xf32> to vector<1x1x128xf32>
    %cst_81 = arith.constant dense<0.000000e+00> : vector<1xf32>
    %315 = vector.multi_reduction <add>, %314, %cst_81 [1, 2] : vector<1x1x128xf32> to vector<1xf32>
    %316 = vector.shape_cast %315 : vector<1xf32> to vector<1x1x1xf32>
    %317 = vector.extract %316[0, 0, 0] : f32 from vector<1x1x1xf32>
    %318 = vector.broadcast %317 : f32 to vector<1x1xf32>
    %319 = vector.shape_cast %125 : vector<1x1xf32> to vector<1x1xf32>
    %320 = vector.broadcast %319 : vector<1x1xf32> to vector<8x128xf32>
    %c0_82 = arith.constant 0 : index
    %c0_83 = arith.constant 0 : index
    %c0_84 = arith.constant 0 : index
    %321 = vector.load %arg6[%c0_82, %c0_83, %c0_84] : memref<1x8x128xf32, #tpu.memory_space<vmem>>, vector<1x8x128xf32>
    %322 = vector.shape_cast %321 : vector<1x8x128xf32> to vector<8x128xf32>
    %323 = vector.shape_cast %320 : vector<8x128xf32> to vector<1x8x128xf32>
    tpu.vector_store %arg6[%c0_82, %c0_83, %c0_84], %323 {strides = array<i32>} : memref<1x8x128xf32, #tpu.memory_space<vmem>>, vector<1x8x128xf32>,
    %324 = vector.shape_cast %318 : vector<1x1xf32> to vector<1x1xf32>
    %325 = vector.broadcast %324 : vector<1x1xf32> to vector<8x128xf32>
    %c0_85 = arith.constant 0 : index
    %c0_86 = arith.constant 0 : index
    %c0_87 = arith.constant 0 : index
    %326 = vector.load %arg7[%c0_85, %c0_86, %c0_87] : memref<1x8x128xf32, #tpu.memory_space<vmem>>, vector<1x8x128xf32>
    %327 = vector.shape_cast %326 : vector<1x8x128xf32> to vector<8x128xf32>
    %328 = vector.shape_cast %325 : vector<8x128xf32> to vector<1x8x128xf32>
    tpu.vector_store %arg7[%c0_85, %c0_86, %c0_87], %328 {strides = array<i32>} : memref<1x8x128xf32, #tpu.memory_space<vmem>>, vector<1x8x128xf32>,
    return
  }
  func.func @transform_0(%arg0: i32) -> (i32, i32) {
    %c0_i32 = arith.constant 0 : i32
    %c0_i32_0 = arith.constant 0 : i32
    return %c0_i32, %arg0 : i32, i32
  }
  func.func @transform_1(%arg0: i32) -> (i32, i32) {
    %c0_i32 = arith.constant 0 : i32
    %c0_i32_0 = arith.constant 0 : i32
    return %c0_i32, %arg0 : i32, i32
  }
  func.func @transform_2(%arg0: i32) -> (i32, i32) {
    %c0_i32 = arith.constant 0 : i32
    %c0_i32_0 = arith.constant 0 : i32
    return %c0_i32, %arg0 : i32, i32
  }
  func.func @transform_3(%arg0: i32) -> (i32, i32) {
    %c0_i32 = arith.constant 0 : i32
    %c0_i32_0 = arith.constant 0 : i32
    return %c0_i32, %arg0 : i32, i32
  }
  func.func @transform_4(%arg0: i32) -> (i32, i32) {
    %c0_i32 = arith.constant 0 : i32
    %c0_i32_0 = arith.constant 0 : i32
    return %c0_i32, %arg0 : i32, i32
  }
  func.func @transform_5(%arg0: i32) -> (i32, i32, i32) {
    %c0_i32 = arith.constant 0 : i32
    %c0_i32_0 = arith.constant 0 : i32
    %c0_i32_1 = arith.constant 0 : i32
    return %arg0, %c0_i32, %c0_i32_0 : i32, i32, i32
  }
  func.func @transform_6(%arg0: i32) -> (i32, i32, i32) {
    %c0_i32 = arith.constant 0 : i32
    %c0_i32_0 = arith.constant 0 : i32
    %c0_i32_1 = arith.constant 0 : i32
    return %arg0, %c0_i32, %c0_i32_0 : i32, i32, i32
  }
}

</mosaic_0001>

<bundles_post_ra>
// kernel: tpu_custom_call.1
= control target key start
LH: loop header
LB: loop body
LE: loop exit
PB: predicated region body
PF: predicated region fallthrough
CT: control target
= control target key end

     0   :  { %12 = vsyncpa [#allocation3], 0  ;;  %s1830_s0 = inlined_call_operand.hbm [shape: f32[64,128], index: 0, kind: input, shape index: {}]   ;;  %s1831_s1 = inlined_call_operand.hbm [shape: f32[5,128], index: 1, kind: input, shape index: {}]   ;;  %s1832_s2 = inlined_call_operand.hbm [shape: f32[5,128], index: 2, kind: input, shape index: {}]   ;;  %s1833_s3 = inlined_call_operand.vmem [shape: f32[2,128], index: 3, kind: input, shape index: {}]   ;;  %s1834_s4 = inlined_call_operand.vmem [shape: f32[1,128], index: 4, kind: input, shape index: {}]   ;;  %s1835_s5 = inlined_call_operand.hbm [shape: f32[1,8,128], index: 5, kind: output, shape index: {0}]   ;;  %s1836_s6 = inlined_call_operand.hbm [shape: f32[1,8,128], index: 6, kind: output, shape index: {1}]  }
   0x1   :  { %13 = vsyncpa [#allocation6], 0 }
   0x2   :  { %14 = vsyncpa [#allocation4], 0  ;;  %s34_s23 = sshll.u32 %s1831_s1, 4  ;;  %s35_s23 = int_to_ptr.hbm [resolvable:$true] %s34_s23 }
   0x3   :  { %15 = vsyncpa [#allocation10], 0  ;;  %s1393_s24 = smov [#allocation5]   ;;  %s20_s28 = sshll.u32 %s1830_s0, 4  ;;  %s21_s28 = int_to_ptr.hbm [resolvable:$true] %s20_s28 }
   0x4   :  { %s36_s25 = sshll.u32 %s1393_s24, 4  ;;  %s1394_s29 = smov [#allocation2]   ;;  %s37_s25 = int_to_ptr.vmem [resolvable:$true] %s36_s25 }
   0x5   :  { %39 = dma.hbm_to_vmem [thread:$0]  %s35_s23, 128, %s37_s25, [#allocation6]  }
   0x6   :  { %s22_s30 = sshll.u32 %s1394_s29, 4  ;;  %s1395_s7 = smov 128   ;;  %s23_s30 = int_to_ptr.vmem [resolvable:$true] %s22_s30 }
   0x7   :  { %s1396_s8 = smov 8   ;;  %s45_s1 = sshll.u32 %s1832_s2, 4  ;;  %s46_s1 = int_to_ptr.hbm [resolvable:$true] %s45_s1 }
   0x8   :  { %28 = dma.hbm_to_vmem [thread:$0]  %s21_s28, 1024, %s23_s30, [#allocation3], %s1395_s7, %s1395_s7, %s1396_s8  }
   0x9   :  { %s1397_s11 = smov [#allocation7]  }
   0xa   :  { %s47_s12 = sshll.u32 %s1397_s11, 4  ;;  %s48_s12 = int_to_ptr.vmem [resolvable:$true] %s47_s12 }
   0xb   :  { %50 = dma.hbm_to_vmem [thread:$0]  %s46_s1, 128, %s48_s12, [#allocation6]  }
   0xc   :  { %1385 = dma.done.wait [#allocation3], 1024  }
   0xd   :  { %1386 = vsyncadd [#allocation3], 4294966272 }
   0xe   :  { %1387 = dma.done.wait [#allocation6], 256  }
   0xf   :  { %1388 = vsyncadd [#allocation6], 4294967040  ;;  %v1451_v0 = vld [vmem:[#allocation5] sm:$0x1f]  ;;  %v1453_v1 = vld [vmem:[#allocation7] sm:$0x1f] }
  0x10   :  { %v72_v2 = vand.u32 2147483647, %v1451_v0  ;;  %v75_v3 = vand.u32 2139095040, %v1451_v0  ;;  %v419_v4 = vand.u32 2147483647, %v1453_v1  ;;  %v422_v5 = vand.u32 2139095040, %v1453_v1 }
  0x11   :  { %v1398_v23 = vmov 683565275   ;;  %v1399_v25 = vmov 2475754826   ;;  %v1400_v27 = vmov 2131351028  }
  0x12   :  { %v76_v6 = vshrl.u32 %v75_v3, 23  ;;  %v79_v7 = vand.u32 8388607, %v72_v2  ;;  %v423_v8 = vshrl.u32 %v422_v5, 23  ;;  %v426_v12 = vand.u32 8388607, %v419_v4 }
  0x13   :  { %v1401_v29 = vmov 2102212464   ;;  %v1402_v31 = vmov 920167782   ;;  %v1403_v40 = vmov 1326507024  }
  0x14   :  { %v1194_v9 = vadd.s32 4294967169, %v76_v6  ;;  %v80_v10 = vor.u32 8388608, %v79_v7  ;;  %v1200_v11 = vadd.s32 4294967169, %v423_v8  ;;  %v427_v17 = vor.u32 8388608, %v426_v12  ;;  %s1167_s19 = sshll.u32 %s1835_s5, 4  ;;  %s1406_s21 = smov [#allocation9]   ;;  %s1168_s19 = int_to_ptr.hbm [resolvable:$true] %s1167_s19 }
  0x15   :  { %s1176_s22 = sshll.u32 %s1406_s21, 4  ;;  %s1178_s25 = sshll.u32 %s1836_s6, 4  ;;  %s1177_s22 = int_to_ptr.vmem [resolvable:$true] %s1176_s22  ;;  %s1179_s25 = int_to_ptr.hbm [resolvable:$true] %s1178_s25 }
  0x16   :  { %v82_v13 = vadd.s32 1, %v1194_v9  ;;  %v429_v14 = vadd.s32 1, %v1200_v11  ;;  %v1463_v16 = vshll.u32 %v80_v10, 8  ;;  %v1473_v34 = vshll.u32 %v427_v17, 8 }
  0x18   :  { %vm83_vm0 = vcmp.gt.s32.totalorder %v82_v13, 0  ;;  %vm430_vm1 = vcmp.gt.s32.totalorder %v429_v14, 0  ;;  %v121_v33 = vand.u32 65535, %v1463_v16  ;;  %v122_v38 = vshrl.u32 %v1463_v16, 16 }
  0x19   :  { %v84_v15 = vsel %vm83_vm0, %v82_v13, 0  ;;  %v431_v19 = vsel %vm430_vm1, %v429_v14, 0 }
  0x1a   :  { %v86_v18 = vand.u32 31, %v84_v15  ;;  %v1465_v20 = vshrl.u32 %v84_v15, 5  ;;  %v1467_v21 = vand.u32 31, %v431_v19  ;;  %v1491_v51 = vshrl.u32 %v431_v19, 5 }
  0x1c   :  { %v87_v22 = vsub.s32 32, %v86_v18  ;;  %v89_v24 = vshll.u32 %v1398_v23, %v86_v18  ;;  %v92_v26 = vshll.u32 %v1399_v25, %v86_v18  ;;  %v95_v28 = vshll.u32 %v1400_v27, %v86_v18 }
  0x1d   :  { %v98_v30 = vshll.u32 %v1401_v29, %v86_v18  ;;  %v101_v32 = vshll.u32 %v1402_v31, %v86_v18  ;;  %vm104_vm2 = vcmp.lt.s32.totalorder %v1465_v20, 1  ;;  %vm107_vm3 = vcmp.lt.s32.totalorder %v1465_v20, 4 }
  0x1e   :  { %v90_v35 = vshrl.u32 %v1399_v25, %v87_v22  ;;  %v93_v36 = vshrl.u32 %v1400_v27, %v87_v22  ;;  %v96_v37 = vshrl.u32 %v1401_v29, %v87_v22  ;;  %v99_v39 = vshrl.u32 %v1402_v31, %v87_v22 }
  0x1f   :  { %v102_v41 = vshrl.u32 %v1403_v40, %v87_v22  ;;  %v1482_v45 = vsub.s32 32, %v1467_v21  ;;  %v88_v46 = vshrl.u32 %v1398_v23, %v87_v22  ;;  %vm106_vm4 = vcmp.lt.s32.totalorder %v1465_v20, 3 }
  0x20   :  { %v91_v42 = vor.u32 %v90_v35, %v89_v24  ;;  %v94_v43 = vor.u32 %v93_v36, %v92_v26  ;;  %v97_v44 = vor.u32 %v96_v37, %v95_v28  ;;  %v100_v47 = vor.u32 %v99_v39, %v98_v30 }
  0x21   :  { %v103_v48 = vor.u32 %v102_v41, %v101_v32  ;;  %vm105_vm5 = vcmp.lt.s32.totalorder %v1465_v20, 2  ;;  %v436_v54 = vshll.u32 %v1398_v23, %v1467_v21  ;;  %v439_v55 = vshll.u32 %v1399_v25, %v1467_v21 }
  0x22   :  { %v112_v49 = vsel %vm104_vm2, %v91_v42, %v94_v43  ;;  %v116_v50 = vsel %vm104_vm2, %v94_v43, %v97_v44  ;;  %v113_v52 = vsel %vm107_vm3, %v100_v47, 920167782  ;;  %v109_v56 = vsel %vm107_vm3, %v97_v44, 2102212464 }
  0x23   :  { %v117_v53 = vsel %vm107_vm3, %v103_v48, 1326507024  ;;  %v114_v57 = vsel %vm106_vm4, %v97_v44, %v113_v52  ;;  %v437_v59 = vshrl.u32 %v1399_v25, %v1482_v45  ;;  %v108_v60 = vsel %vm104_vm2, %v88_v46, %v91_v42 }
  0x24   :  { %v118_v58 = vsel %vm106_vm4, %v100_v47, %v117_v53  ;;  %v115_v61 = vsel %vm105_vm5, %v112_v49, %v114_v57  ;;  %v440_v63 = vshrl.u32 %v1400_v27, %v1482_v45  ;;  %v110_v8 = vsel %vm106_vm4, %v94_v43, %v109_v56 }
  0x25   :  { %v119_v62 = vsel %vm105_vm5, %v116_v50, %v118_v58  ;;  %v145_v6 = vand.u32 65535, %v115_v61  ;;  %v146_v7 = vshrl.u32 %v115_v61, 16  ;;  %v1516_v9 = vor.u32 %v437_v59, %v436_v54 }
  0x26   :  { %v123_v3 = vand.u32 65535, %v119_v62  ;;  %v124_v5 = vshrl.u32 %v119_v62, 16  ;;  %v1518_v10 = vor.u32 %v440_v63, %v439_v55  ;;  %v442_v11 = vshll.u32 %v1400_v27, %v1467_v21 }
  0x27   :  { %v443_v15 = vshrl.u32 %v1401_v29, %v1482_v45  ;;  %v147_v18 = vmul.u32 %v145_v6, %v121_v33  ;;  %v148_v19 = vmul.u32 %v146_v7, %v121_v33  ;;  %v149_v22 = vmul.u32 %v145_v6, %v122_v38 }
  0x28   :  { %v125_v12 = vmul.u32 %v123_v3, %v121_v33  ;;  %v126_v13 = vmul.u32 %v124_v5, %v121_v33  ;;  %v127_v14 = vmul.u32 %v123_v3, %v122_v38  ;;  %v128_v17 = vmul.u32 %v124_v5, %v122_v38 }
  0x29   :  { %v150_v28 = vmul.u32 %v146_v7, %v122_v38  ;;  %v151_v32 = vshll.u32 %v148_v19, 16  ;;  %v152_v35 = vshrl.u32 %v148_v19, 16  ;;  %v153_v36 = vshll.u32 %v149_v22, 16 }
  0x2a   :  { %v129_v24 = vshll.u32 %v126_v13, 16  ;;  %v130_v25 = vshrl.u32 %v126_v13, 16  ;;  %v131_v26 = vshll.u32 %v127_v14, 16  ;;  %v132_v30 = vshrl.u32 %v127_v14, 16 }
  0x2b   :  { %v154_v37 = vshrl.u32 %v149_v22, 16  ;;  %v445_v39 = vshll.u32 %v1401_v29, %v1467_v21  ;;  %v1404_v41 = vmov 0   ;;  %vm155_vm7 = vc.u32 %v147_v18, %v151_v32 }
  0x2c   :  { %vm133_vm6 = vc.u32 %v125_v12, %v129_v24  ;;  %v135_v27 = vadd.s32 %v129_v24, %v125_v12  ;;  %v157_v33 = vadd.s32 %v151_v32, %v147_v18  ;;  %v446_v43 = vshrl.u32 %v1402_v31, %v1482_v45 }
  0x2d   :  { %v134_v42 = vsel %vm133_vm6, 1, %v1404_v41  ;;  %v156_v38 = vsel %vm155_vm7, 1, %v1404_v41  ;;  %v448_v46 = vshll.u32 %v1402_v31, %v1467_v21  ;;  %v444_v29 = vor.u32 %v443_v15, %v442_v11 }
  0x2e   :  { %v136_v44 = vadd.s32 %v134_v42, %v128_v17  ;;  %vm137_vm8 = vc.u32 %v135_v27, %v131_v26  ;;  %v158_v48 = vadd.s32 %v156_v38, %v150_v28  ;;  %vm159_vm9 = vc.u32 %v157_v33, %v153_v36 }
  0x2f   :  { %v138_v47 = vsel %vm137_vm8, 1, %v1404_v41  ;;  %v160_v50 = vsel %vm159_vm9, 1, %v1404_v41  ;;  %v447_v52 = vor.u32 %v446_v43, %v445_v39  ;;  %v449_v53 = vshrl.u32 %v1403_v40, %v1482_v45 }
  0x30   :  { %v140_v49 = vadd.s32 %v138_v47, %v136_v44  ;;  %v1535_v54 = vadd.s32 %v157_v33, %v153_v36  ;;  %v162_v55 = vadd.s32 %v160_v50, %v158_v48  ;;  %vm451_vm10 = vcmp.lt.s32.totalorder %v1491_v51, 1 }
  0x31   :  { %vm453_vm11 = vcmp.lt.s32.totalorder %v1491_v51, 3  ;;  %v450_v31 = vor.u32 %v449_v53, %v448_v46  ;;  %vm452_vm12 = vcmp.lt.s32.totalorder %v1491_v51, 2  ;;  %vm454_vm13 = vcmp.lt.s32.totalorder %v1491_v51, 4 }
  0x32   :  { %v141_v21 = vadd.s32 %v140_v49, %v130_v25  ;;  %v111_v56 = vsel %vm105_vm5, %v108_v60, %v110_v8  ;;  %v163_v57 = vadd.s32 %v162_v55, %v152_v35  ;;  %v459_v40 = vsel %vm451_vm10, %v1516_v9, %v1518_v10 }
  0x33   :  { %v460_v58 = vsel %vm454_vm13, %v447_v52, 920167782  ;;  %v463_v62 = vsel %vm451_vm10, %v1518_v10, %v444_v29  ;;  %v468_v20 = vand.u32 65535, %v1473_v34  ;;  %v464_v3 = vsel %vm454_vm13, %v450_v31, 1326507024 }
  0x34   :  { %v1549_v59 = vadd.s32 %v141_v21, %v132_v30  ;;  %v461_v61 = vsel %vm453_vm11, %v444_v29, %v460_v58  ;;  %v164_v60 = vadd.s32 %v163_v57, %v154_v37  ;;  %v469_v5 = vshrl.u32 %v1473_v34, 16 }
  0x35   :  { %v462_v63 = vsel %vm452_vm12, %v459_v40, %v461_v61  ;;  %v165_v6 = vmul.u32 %v1463_v16, %v111_v56  ;;  %v465_v7 = vsel %vm453_vm11, %v447_v52, %v464_v3  ;;  %v435_v18 = vshrl.u32 %v1398_v23, %v1482_v45 }
  0x36   :  { %vm167_vm14 = vc.u32 %v1549_v59, %v1535_v54  ;;  %v492_v8 = vand.u32 65535, %v462_v63  ;;  %v168_v11 = vadd.s32 1, %v164_v60  ;;  %v466_v12 = vsel %vm452_vm12, %v463_v62, %v465_v7 }
  0x37   :  { %v493_v13 = vshrl.u32 %v462_v63, 16  ;;  %v470_v14 = vand.u32 65535, %v466_v12  ;;  %v471_v15 = vshrl.u32 %v466_v12, 16  ;;  %v456_v35 = vsel %vm454_vm13, %v444_v29, 2102212464 }
  0x38   :  { %v169_v17 = vsel %vm167_vm14, %v168_v11, %v164_v60  ;;  %v496_v16 = vmul.u32 %v492_v8, %v469_v5  ;;  %v494_v26 = vmul.u32 %v492_v8, %v468_v20  ;;  %v455_v37 = vsel %vm451_vm10, %v435_v18, %v1516_v9 }
  0x39   :  { %v495_v19 = vmul.u32 %v493_v13, %v468_v20  ;;  %v170_v22 = vadd.s32 %v169_v17, %v165_v6  ;;  %v472_v24 = vmul.u32 %v470_v14, %v468_v20  ;;  %v473_v25 = vmul.u32 %v471_v15, %v468_v20 }
  0x3a   :  { %v474_v28 = vmul.u32 %v470_v14, %v469_v5  ;;  %v475_v36 = vmul.u32 %v471_v15, %v469_v5  ;;  %v497_v23 = vmul.u32 %v493_v13, %v469_v5  ;;  %v500_v45 = vshll.u32 %v496_v16, 16 }
  0x3b   :  { %v498_v30 = vshll.u32 %v495_v19, 16  ;;  %v171_v32 = vadd.s32 536870912, %v170_v22  ;;  %v476_v27 = vshll.u32 %v473_v25, 16  ;;  %v457_v43 = vsel %vm453_vm11, %v1518_v10, %v456_v35 }
  0x3c   :  { %v478_v39 = vshll.u32 %v474_v28, 16  ;;  %v477_v9 = vshrl.u32 %v473_v25, 16  ;;  %v499_v49 = vshrl.u32 %v495_v19, 16  ;;  %v479_v53 = vshrl.u32 %v474_v28, 16 }
  0x3d   :  { %v1576_v42 = vshrl.u32 %v171_v32, 30  ;;  %vm480_vm15 = vc.u32 %v472_v24, %v476_v27  ;;  %v482_v33 = vadd.s32 %v476_v27, %v472_v24  ;;  %vm502_vm0 = vc.u32 %v494_v26, %v498_v30 }
  0x3e   :  { %v481_v44 = vsel %vm480_vm15, 1, %v1404_v41  ;;  %v503_v38 = vsel %vm502_vm0, 1, %v1404_v41  ;;  %v504_v46 = vadd.s32 %v498_v30, %v494_v26  ;;  %v501_v21 = vshrl.u32 %v496_v16, 16 }
  0x3f   :  { %v173_v47 = vshll.u32 %v1576_v42, 30  ;;  %v483_v48 = vadd.s32 %v481_v44, %v475_v36  ;;  %vm484_vm1 = vc.u32 %v482_v33, %v478_v39  ;;  %v505_v50 = vadd.s32 %v503_v38, %v497_v23 }
  0x40   :  { %v485_v29 = vsel %vm484_vm1, 1, %v1404_v41  ;;  %vm506_vm2 = vc.u32 %v504_v46, %v500_v45  ;;  %v508_v40 = vadd.s32 %v504_v46, %v500_v45  ;;  %v458_v58 = vsel %vm452_vm12, %v455_v37, %v457_v43 }
  0x41   :  { %v174_v52 = vsub.s32 %v170_v22, %v173_v47  ;;  %v487_v55 = vadd.s32 %v485_v29, %v483_v48  ;;  %v507_v10 = vsel %vm506_vm2, 1, %v1404_v41  ;;  %v512_v3 = vmul.u32 %v1473_v34, %v458_v58 }
  0x42   :  { %v509_v31 = vadd.s32 %v507_v10, %v505_v50  ;;  %v166_v41 = vadd.s32 %v1535_v54, %v1549_v59  ;;  %vm74_vm7 = vcmp.lt.s32.totalorder %v1451_v0, 0  ;;  %v196_v28 = vsub.s32 4, %v1576_v42 }
  0x43   :  { %vm175_vm3 = vcmp.lt.s32.totalorder %v174_v52, 0  ;;  %v176_v56 = vsub.s32 0, %v174_v52  ;;  %v488_v57 = vadd.s32 %v487_v55, %v477_v9  ;;  %vm73_vm8 = vcmp.le.f32.partialorder %v72_v2, 0.7853982 }
  0x44   :  { %v510_v61 = vadd.s32 %v509_v31, %v499_v49  ;;  %v197_v27 = vsel %vm74_vm7, %v196_v28, %v1576_v42  ;;  %vm421_vm12 = vcmp.lt.s32.totalorder %v1453_v1, 0  ;;  %vm1603_vm14 = vcmp.le.f32.partialorder %v419_v4, 0.7853982 }
  0x45   :  { %v177_v62 = vsel %vm175_vm3, %v176_v56, %v174_v52  ;;  %v489_v20 = vadd.s32 %v488_v57, %v479_v53  ;;  %v199_v33 = vsel %vm73_vm8, 0, %v197_v27  ;;  %vm215_vm2 = vweird.f32 %v1451_v0 }
  0x46   :  { %v178_v60 = vclz %v177_v62  ;;  %v511_v63 = vadd.s32 %v510_v61, %v501_v21  ;;  %v370_v29 = vadd.s32 3, %v199_v33  ;;  %v216_v31 = vand.u32 3, %v199_v33 }
  0x47   :  { %vm514_vm4 = vc.u32 %v489_v20, %v508_v40  ;;  %v513_v45 = vadd.s32 %v508_v40, %v489_v20 }
  0x48   :  { %v1195_v5 = vadd.s32 4294967294, %v178_v60  ;;  %v515_v6 = vadd.s32 1, %v511_v63  ;;  %v371_v56 = vand.u32 3, %v370_v29  ;;  %vm221_vm10 = vcmp.eq.s32.totalorder %v216_v31, 2 }
  0x49   :  { %vm217_vm13 = vcmp.lt.s32.totalorder %v216_v31, 2  ;;  %vm218_vm15 = vcmp.eq.s32.totalorder %v216_v31, 0 }
  0x4a   :  { %vm1196_vm5 = vcmp.lt.s32.totalorder %v1195_v5, 0  ;;  %v516_v7 = vsel %vm514_vm4, %v515_v6, %v511_v63  ;;  %vm376_vm11 = vcmp.eq.s32.totalorder %v371_v56, 2  ;;  %vm373_vm0 = vcmp.eq.s32.totalorder %v371_v56, 0 }
  0x4b   :  { %v181_v8 = vsel %vm1196_vm5, 0, %v1195_v5  ;;  %v517_v11 = vadd.s32 %v516_v7, %v512_v3  ;;  %vm372_vm1 = vcmp.lt.s32.totalorder %v371_v56, 2 }
  0x4c   :  { %v182_v12 = vsub.s32 32, %v181_v8  ;;  %v183_v51 = vshll.u32 %v174_v52, %v181_v8  ;;  %v186_v13 = vsub.s32 4294967266, %v181_v8 }
  0x4d   :  { %v518_v17 = vadd.s32 536870912, %v517_v11 }
  0x4e   :  { %v184_v14 = vshrl.u32 %v166_v41, %v182_v12  ;;  %v187_v15 = vadd.s32 127, %v186_v13 }
  0x4f   :  { %v1591_v16 = vshrl.u32 %v518_v17, 30 }
  0x50   :  { %v185_v18 = vor.u32 %v184_v14, %v183_v51  ;;  %v188_v19 = vshll.u32 %v187_v15, 23  ;;  %v70_v51 = vmul.f32 %v1451_v0, %v1451_v0 }
  0x51   :  { %v520_v24 = vshll.u32 %v1591_v16, 30  ;;  %v543_v7 = vsub.s32 4, %v1591_v16 }
  0x52   :  { %v189_v34 = vor.u32 4788187, %v188_v19  ;;  %v192_v22 = vcvt.s32.f32 %v185_v18 }
  0x53   :  { %v521_v54 = vsub.s32 %v517_v11, %v520_v24  ;;  %v544_v19 = vsel %vm421_vm12, %v543_v7, %v1591_v16  ;;  %v71_v24 = vmul.f32 0.083333336, %v70_v51 }
  0x54   :  { %v190_v25 = vand.u32 2147483647, %v189_v34 }
  0x55   :  { %vm522_vm6 = vcmp.lt.s32.totalorder %v521_v54, 0  ;;  %v523_v26 = vsub.s32 0, %v521_v54 }
  0x56   :  { %v193_v59 = vmul.f32 %v192_v22, %v190_v25 }
  0x57   :  { %v524_v32 = vsel %vm522_vm6, %v523_v26, %v521_v54 }
  0x58   :  { %v194_v30 = vxor.u32 2147483648, %v193_v59  ;;  %v525_v35 = vclz %v524_v32 }
  0x5a   :  { %v195_v36 = vsel %vm74_vm7, %v194_v30, %v193_v59  ;;  %v1201_v39 = vadd.s32 4294967294, %v525_v35 }
  0x5b   :  { %v198_v37 = vsel %vm73_vm8, %v1451_v0, %v195_v36  ;;  %v417_v36 = vmul.f32 %v1453_v1, %v1453_v1 }
  0x5c   :  { %v200_v23 = vmul.f32 %v198_v37, %v198_v37  ;;  %vm1202_vm9 = vcmp.lt.s32.totalorder %v1201_v39, 0 }
  0x5d   :  { %v528_v38 = vsel %vm1202_vm9, 0, %v1201_v39  ;;  %vm562_vm9 = vweird.f32 %v1453_v1 }
  0x5e   :  { %v201_v43 = vmul.f32 -0.001358992, %v200_v23  ;;  %v208_v44 = vmul.f32 -0.00019511016, %v200_v23  ;;  %v529_v46 = vsub.s32 32, %v528_v38  ;;  %v530_v47 = vshll.u32 %v521_v54, %v528_v38 }
  0x5f   :  { %v533_v9 = vsub.s32 4294967266, %v528_v38  ;;  %v546_v54 = vsel %vm1603_vm14, 0, %v544_v19  ;;  %v418_v38 = vmul.f32 0.083333336, %v417_v36 }
  0x60   :  { %v202_v2 = vadd.f32 0.041655596, %v201_v43  ;;  %v209_v48 = vadd.f32 0.008332121, %v208_v44  ;;  %v531_v49 = vshrl.u32 %v513_v45, %v529_v46  ;;  %v717_v27 = vadd.s32 3, %v546_v54 }
  0x61   :  { %v534_v50 = vadd.s32 127, %v533_v9  ;;  %v753_v31 = vrot.slane %v418_v38, 1 }
  0x62   :  { %v203_v52 = vmul.f32 %v202_v2, %v200_v23  ;;  %v210_v42 = vmul.f32 %v209_v48, %v200_v23  ;;  %v532_v53 = vor.u32 %v531_v49, %v530_v47  ;;  %v718_v46 = vand.u32 3, %v717_v27 }
  0x63   :  { %v535_v55 = vshll.u32 %v534_v50, 23  ;;  %v755_v7 = vsub.f32 %v418_v38, %v753_v31 }
  0x64   :  { %v204_v10 = vadd.f32 -0.4999988, %v203_v52  ;;  %v211_v21 = vadd.f32 -0.16666654, %v210_v42  ;;  %v539_v40 = vcvt.s32.f32 %v532_v53  ;;  %vm719_vm6 = vcmp.lt.s32.totalorder %v718_v46, 2 }
  0x65   :  { %v536_v57 = vor.u32 4788187, %v535_v55  ;;  %vm720_vm7 = vcmp.eq.s32.totalorder %v718_v46, 0  ;;  %vm723_vm8 = vcmp.eq.s32.totalorder %v718_v46, 2 }
  0x66   :  { %v205_v58 = vmul.f32 %v204_v10, %v200_v23  ;;  %v212_v61 = vmul.f32 %v211_v21, %v200_v23  ;;  %v563_v23 = vand.u32 3, %v546_v54 }
  0x67   :  { %v537_v62 = vand.u32 2147483647, %v536_v57 }
  0x68   :  { %v206_v20 = vadd.f32 1.0, %v205_v58  ;;  %v213_v60 = vadd.f32 1.0, %v212_v61  ;;  %vm564_vm3 = vcmp.lt.s32.totalorder %v563_v23, 2  ;;  %vm565_vm4 = vcmp.eq.s32.totalorder %v563_v23, 0 }
  0x69   :  { %v540_v63 = vmul.f32 %v539_v40, %v537_v62  ;;  %vm568_vm5 = vcmp.eq.s32.totalorder %v563_v23, 2 }
  0x6a   :  { %v214_v3 = vmul.f32 %v213_v60, %v198_v37  ;;  %v222_v5 = vxor.u32 2147483648, %v206_v20  ;;  %v406_v37 = vrot.slane %v71_v24, 1 }
  0x6b   :  { %v541_v41 = vxor.u32 2147483648, %v540_v63 }
  0x6c   :  { %v219_v8 = vxor.u32 2147483648, %v214_v3  ;;  %v223_v11 = vsel %vm221_vm10, %v222_v5, %v214_v3  ;;  %v378_v12 = vsel %vm376_vm11, %v222_v5, %v214_v3  ;;  %v408_v47 = vsub.f32 %v71_v24, %v406_v37 }
  0x6d   :  { %v542_v4 = vsel %vm421_vm12, %v541_v41, %v540_v63 }
  0x6e   :  { %v220_v13 = vsel %vm218_vm15, %v206_v20, %v219_v8  ;;  %v375_v14 = vsel %vm373_vm0, %v206_v20, %v219_v8  ;;  %v545_v15 = vsel %vm1603_vm14, %v1453_v1, %v542_v4 }
  0x6f   :  { %v224_v17 = vsel %vm217_vm13, %v220_v13, %v223_v11  ;;  %v379_v18 = vsel %vm372_vm1, %v375_v14, %v378_v12  ;;  %v547_v34 = vmul.f32 %v545_v15, %v545_v15 }
  0x70   :  { %v380_v22 = vsel %vm215_vm2, nan, %v379_v18  ;;  %v225_v25 = vsel %vm215_vm2, nan, %v224_v17 }
  0x71   :  { %v548_v59 = vmul.f32 -0.001358992, %v547_v34  ;;  %v555_v26 = vmul.f32 -0.00019511016, %v547_v34  ;;  %v382_v28 = vmul.f32 %v380_v22, %v380_v22  ;;  %v381_v30 = vmul.f32 %v225_v25, %v225_v25 }
  0x72   :  { %v410_v50 = vrot.slane %v225_v25, 2  ;;  %v414_v55 = vrot.slane %v380_v22, 2 }
  0x73   :  { %v549_v32 = vadd.f32 0.041655596, %v548_v59  ;;  %v556_v35 = vadd.f32 0.008332121, %v555_v26  ;;  %v388_v45 = vrot.slane %v382_v28, 1  ;;  %v398_v33 = vrot.slane %v381_v30, 1 }
  0x74   :  { %v384_v48 = vrot.slane %v381_v30, 2  ;;  %v395_v49 = vrot.slane %v382_v28, 2  ;;  %v412_v58 = vmul.f32 %v410_v50, %v408_v47 }
  0x75   :  { %v550_v39 = vmul.f32 %v549_v32, %v547_v34  ;;  %v557_v16 = vmul.f32 %v556_v35, %v547_v34  ;;  %v390_v29 = vmul.f32 %v388_v45, %v71_v24  ;;  %v400_v52 = vmul.f32 %v398_v33, %v71_v24 }
  0x76   :  { %v386_v56 = vmul.f32 %v384_v48, %v71_v24  ;;  %v397_v40 = vmul.f32 %v395_v49, %v71_v24  ;;  %v416_v5 = vmul.f32 %v414_v55, %v412_v58  ;;  %v1638_v58 = vld [vmem:[#allocation2] sm:$0xff] }
  0x77   :  { %v551_v43 = vadd.f32 -0.4999988, %v550_v39  ;;  %v558_v44 = vadd.f32 -0.16666654, %v557_v16  ;;  %v392_v57 = vrot.slane %v390_v29, 1  ;;  %v402_v61 = vrot.slane %v400_v52, 1 }
  0x78   :  { %v809_v25 = vmul.f32 %v416_v5, %v416_v5 }
  0x79   :  { %v552_v9 = vmul.f32 %v551_v43, %v547_v34  ;;  %v559_v2 = vmul.f32 %v558_v44, %v547_v34  ;;  %v394_v8 = vadd.f32 %v392_v57, %v386_v56  ;;  %v404_v11 = vadd.f32 %v402_v61, %v397_v40  ;;  %v1640_v61 = vld [vmem:[#allocation2 + $0x8] sm:$0xff] }
  0x7b   :  { %v553_v42 = vadd.f32 1.0, %v552_v9  ;;  %v560_v53 = vadd.f32 1.0, %v559_v2  ;;  %v808_v24 = vmul.f32 %v404_v11, %v394_v8 }
  0x7d   :  { %v561_v10 = vmul.f32 %v560_v53, %v545_v15  ;;  %v569_v21 = vxor.u32 2147483648, %v553_v42  ;;  %v810_v39 = vsub.f32 %v808_v24, %v809_v25  ;;  %v785_v53 = vsub.f32 %v1451_v0, %v1453_v1 }
  0x7f   :  { %v566_v62 = vxor.u32 2147483648, %v561_v10  ;;  %v570_v20 = vsel %vm568_vm5, %v569_v21, %v561_v10  ;;  %v725_v60 = vsel %vm723_vm8, %v569_v21, %v561_v10  ;;  %v811_v46 = vmax.f32 %v810_v39, 0.0  ;;  %v1668_v39 = vld [vmem:[#allocation2 + $0x30] sm:$0xff] }
  0x80   :  { %v786_v31 = vmul.f32 %v785_v53, %v785_v53 }
  0x81   :  { %v567_v63 = vsel %vm565_vm4, %v553_v42, %v566_v62  ;;  %v722_v3 = vsel %vm720_vm7, %v553_v42, %v566_v62  ;;  %v797_v62 = vsub.f32 %v1453_v1, %v1451_v0 }
  0x82   :  { %v571_v6 = vsel %vm564_vm3, %v567_v63, %v570_v20  ;;  %v726_v41 = vsel %vm719_vm6, %v722_v3, %v725_v60  ;;  %v911_v60 = vmax.f32 %v1638_v58, %v1640_v61  ;;  %v788_v63 = vrot.slane %v786_v31, 7  ;;  %v1646_v3 = vld [vmem:[#allocation2 + $0x10] sm:$0xff] }
  0x83   :  { %v572_v12 = vsel %vm562_vm9, nan, %v571_v6  ;;  %v727_v51 = vsel %vm562_vm9, nan, %v726_v41 }
  0x84   :  { %v728_v4 = vmul.f32 %v572_v12, %v572_v12  ;;  %v729_v13 = vmul.f32 %v727_v51, %v727_v51  ;;  %v757_v14 = vrot.slane %v572_v12, 2  ;;  %v761_v15 = vrot.slane %v727_v51, 2 }
  0x85   :  { %v791_v12 = vrot.slane %v786_v31, 6 }
  0x86   :  { %v731_v17 = vrot.slane %v728_v4, 2  ;;  %v735_v18 = vrot.slane %v729_v13, 1  ;;  %v742_v19 = vrot.slane %v729_v13, 2  ;;  %v745_v34 = vrot.slane %v728_v4, 1 }
  0x87   :  { %v759_v22 = vmul.f32 %v757_v14, %v755_v7  ;;  %v912_v7 = vrot.slane %v911_v60, 4  ;;  %v799_v13 = vrot.slane %v797_v62, 6 }
  0x88   :  { %v733_v54 = vmul.f32 %v731_v17, %v418_v38  ;;  %v737_v59 = vmul.f32 %v735_v18, %v418_v38  ;;  %v744_v26 = vmul.f32 %v742_v19, %v418_v38  ;;  %v747_v28 = vmul.f32 %v745_v34, %v418_v38  ;;  %v1656_v18 = vld [vmem:[#allocation2 + $0x20] sm:$0xff]  ;;  %v1658_v19 = vld [vmem:[#allocation2 + $0x28] sm:$0xff] }
  0x89   :  { %v763_v30 = vmul.f32 %v761_v15, %v759_v22  ;;  %v913_v15 = vmax.f32 %v911_v60, %v912_v7 }
  0x8a   :  { %v739_v32 = vrot.slane %v737_v59, 1  ;;  %v749_v35 = vrot.slane %v747_v28, 1  ;;  %v803_v59 = vrot.slane %v785_v53, 7 }
  0x8b   :  { %v1629_v36 = vadd.f32 %v763_v30, %v416_v5  ;;  %v813_v16 = vmul.f32 %v763_v30, %v763_v30  ;;  %v1648_v5 = vld [vmem:[#allocation2 + $0x18] sm:$0xff]  ;;  %v914_v24 = vrot.slane %v913_v15, 2 }
  0x8c   :  { %v741_v27 = vadd.f32 %v739_v32, %v733_v54  ;;  %v751_v37 = vadd.f32 %v749_v35, %v744_v26  ;;  %v1028_v26 = vmax.f32 %v1656_v18, %v1658_v19 }
  0x8d   :  { %v768_v33 = vmul.f32 %v1629_v36, %v1629_v36  ;;  %v801_v32 = vmul.f32 %v799_v13, %v1629_v36  ;;  %v915_v35 = vmax.f32 %v913_v15, %v914_v24 }
  0x8e   :  { %v764_v23 = vadd.f32 %v741_v27, %v394_v8  ;;  %v765_v45 = vadd.f32 %v751_v37, %v404_v11  ;;  %v812_v43 = vmul.f32 %v751_v37, %v741_v27  ;;  %v971_v8 = vmax.f32 %v1646_v3, %v1648_v5 }
  0x8f   :  { %v1029_v37 = vrot.slane %v1028_v26, 4  ;;  %v805_v36 = vmul.f32 %v803_v59, %v801_v32 }
  0x90   :  { %v766_v44 = vmul.f32 %v765_v45, %v764_v23  ;;  %v814_v47 = vsub.f32 %v812_v43, %v813_v16  ;;  %v972_v17 = vrot.slane %v971_v8, 4  ;;  %v790_v28 = vmul.f32 %v788_v63, %v764_v23  ;;  %v1670_v16 = vld [vmem:[#allocation2 + $0x38] sm:$0xff] }
  0x91   :  { %v793_v30 = vmul.f32 %v791_v12, %v765_v45  ;;  %v894_v43 = vmul.f32 0.5, %v1453_v1  ;;  %v1030_v45 = vmax.f32 %v1028_v26, %v1029_v37 }
  0x92   :  { %v1633_v9 = vsub.f32 %v766_v44, %v768_v33  ;;  %v815_v38 = vmax.f32 %v814_v47, 0.0  ;;  %v973_v25 = vmax.f32 %v971_v8, %v972_v17  ;;  %v1088_v44 = vmax.f32 %v1668_v39, %v1670_v16 }
  0x93   :  { %v794_v47 = vadd.f32 %v793_v30, %v790_v28 }
  0x94   :  { %v770_v2 = vadd.f32 1e-07, %v1633_v9  ;;  %v816_v48 = vmul.f32 %v815_v38, %v811_v46  ;;  %v974_v27 = vrot.slane %v973_v25, 2  ;;  %v916_v46 = vrot.slane %v915_v35, 1 }
  0x95   :  { %v896_v38 = vrot.slane %v894_v43, 2 }
  0x96   :  { %1229 = vrcp.f32 %v770_v2  ;;  %vm824_vm10 = vcmp.eq.f32.partialorder %v816_v48, inf  ;;  %v827_v40 = vand.u32 2147483648, %v816_v48  ;;  %vm826_vm11 = vcmp.eq.f32.partialorder %v816_v48, 0.0 }
  0x97   :  { %1231 = vrsqrt.f32 %v816_v48  ;;  %vm776_vm12 = vweird.f32 %v770_v2  ;;  %v782_v6 = vand.u32 2147483648, %v770_v2  ;;  %v780_v0 = vand.u32 2147483647, %v770_v2 }
  0x98   :  { %v975_v23 = vmax.f32 %v973_v25, %v974_v27  ;;  %v902_v59 = vadd.f32 %v896_v38, %v1453_v1 }
  0x99   :  { %v783_v34 = vor.u32 1.1754944e-38, %v782_v6  ;;  %vm781_vm15 = vcmp.eq.f32.partialorder %v780_v0, 8.507059e+37 }
  0x9c   :  { %v1230_v29 = vpop.eup %1229 }
  0x9d   :  { %v1232_v49 = vpop.eup %1231  ;;  %v772_v52 = vmul.f32 %v1230_v29, %v770_v2  ;;  %vm777_vm13 = vweird.f32 %v1230_v29  ;;  %v1089_v2 = vrot.slane %v1088_v44, 4 }
  0x9e   :  { %v818_v50 = vmul.f32 %v1232_v49, %v816_v48  ;;  %vm1652_vm14 = vmor %vm776_vm12, %vm777_vm13 }
  0x9f   :  { %v773_v10 = vsub.f32 1.0, %v772_v52 }
  0xa0   :  { %v819_v42 = vmul.f32 %v1232_v49, %v818_v50  ;;  %v1031_v50 = vrot.slane %v1030_v45, 2 }
  0xa1   :  { %v774_v57 = vmul.f32 %v1230_v29, %v773_v10 }
  0xa2   :  { %v820_v55 = vmul.f32 0.5, %v819_v42  ;;  %v1032_v60 = vmax.f32 %v1030_v45, %v1031_v50 }
  0xa3   :  { %v775_v11 = vadd.f32 %v1230_v29, %v774_v57  ;;  %v1090_v57 = vmax.f32 %v1088_v44, %v1089_v2 }
  0xa4   :  { %v821_v21 = vsub.f32 1.5, %v820_v55  ;;  %v898_v55 = vsub.f32 %v1453_v1, %v896_v38  ;;  %v1033_v0 = vrot.slane %v1032_v60, 1 }
  0xa5   :  { %v779_v54 = vsel %vm1652_vm14, %v1230_v29, %v775_v11  ;;  %v1675_v29 = vmax.f32 %v915_v35, %v916_v46  ;;  %v1091_v4 = vrot.slane %v1090_v57, 2  ;;  %v906_v35 = vlaneseq }
  0xa6   :  { %v822_v56 = vmul.f32 %v1232_v49, %v821_v21  ;;  %v784_v33 = vsel %vm781_vm15, %v783_v34, %v779_v54  ;;  %v976_v49 = vrot.slane %v975_v23, 1  ;;  %v893_v21 = vld [vmem:[%s1833_s3] sm:$0x3]  ;;  %v1704_v25 = vmax.f32 %v1032_v60, %v1033_v0 }
  0xa7   :  { %v806_v42 = vmul.f32 0.5, %v784_v33  ;;  %v918_v31 = vsub.f32 %v1638_v58, %v1675_v29  ;;  %v899_v62 = vsub.f32 %v893_v21, %v898_v55  ;;  %v1715_v30 = vmax.f32 %v1090_v57, %v1091_v4 }
  0xa8   :  { %v823_v20 = vmul.f32 %v822_v56, %v816_v48  ;;  %v919_v56 = vsub.f32 %v1640_v61, %v1675_v29  ;;  %v1035_v28 = vsub.f32 %v1656_v18, %v1704_v25  ;;  %v1036_v43 = vsub.f32 %v1658_v19, %v1704_v25 }
  0xa9   :  { %v920_v6 = vmul.f32 1.442695, %v918_v31  ;;  %v1691_v7 = vmax.f32 %v899_v62, 0.0  ;;  %v807_v54 = vmul.f32 %v806_v42, %v805_v36  ;;  %v1093_v2 = vrot.slane %v1715_v30, 1 }
  0xaa   :  { %v825_v41 = vsel %vm824_vm10, %v816_v48, %v823_v20  ;;  %v795_v48 = vmul.f32 0.25, %v784_v33  ;;  %v1689_v20 = vmax.f32 %v975_v23, %v976_v49  ;;  %v903_v33 = vsub.f32 %v902_v59, %v893_v21 }
  0xab   :  { %v828_v51 = vsel %vm826_vm11, %v827_v40, %v825_v41  ;;  %v922_v41 = vmul.f32 1.442695, %v919_v56  ;;  %v1037_v44 = vmul.f32 1.442695, %v1035_v28  ;;  %v1721_v23 = vshrl.u32 %v906_v35, 7 }
  0xac   :  { %v829_v14 = vmul.f32 4.0, %v828_v51  ;;  %v978_v8 = vsub.f32 %v1646_v3, %v1689_v20  ;;  %v979_v11 = vsub.f32 %v1648_v5, %v1689_v20  ;;  %v796_v34 = vmul.f32 %v795_v48, %v794_v47 }
  0xad   :  { %v1725_v49 = vadd.s32 8, %v1721_v23  ;;  %v1727_v42 = vmax.f32 %v903_v33, 0.0  ;;  %v1039_v55 = vmul.f32 1.442695, %v1036_v43 }
  0xae   :  { %v1660_v22 = vadd.f32 1e-07, %v829_v14  ;;  %v901_v14 = vmin.f32 %v1691_v7, 14.99  ;;  %v980_v15 = vmul.f32 1.442695, %v978_v8  ;;  %v850_v36 = vadd.f32 %v807_v54, %v796_v34 }
  0xaf   :  { %v982_v17 = vmul.f32 1.442695, %v979_v11 }
  0xb0   :  { %1233 = vrcp.f32 %v1660_v22  ;;  %vm836_vm0 = vweird.f32 %v1660_v22  ;;  %v842_v53 = vand.u32 2147483648, %v1660_v22  ;;  %v840_v40 = vand.u32 2147483647, %v1660_v22 }
  0xb1   :  { %1235 = vpow2.f32 %v920_v6 }
  0xb2   :  { %v843_v51 = vor.u32 1.1754944e-38, %v842_v53  ;;  %1237 = vpow2.f32 %v922_v41  ;;  %vm841_vm3 = vcmp.eq.f32.partialorder %v840_v40, 8.507059e+37 }
  0xb3   :  { %1239 = vpow2.f32 %v980_v15 }
  0xb4   :  { %1241 = vpow2.f32 %v982_v17 }
  0xb5   :  { %1243 = vpow2.f32 %v1037_v44 }
  0xb6   :  { %v1234_v52 = vpop.eup %1233 }
  0xb7   :  { %v832_v10 = vmul.f32 %v1234_v52, %v1660_v22  ;;  %vm837_vm1 = vweird.f32 %v1234_v52  ;;  %v1709_v22 = vfloor.f32 %v901_v14  ;;  %v1236_v37 = vpop.eup %1235 }
  0xb8   :  { %vm1699_vm2 = vmor %vm836_vm0, %vm837_vm1  ;;  %v1238_v46 = vpop.eup %1237 }
  0xb9   :  { %v833_v63 = vsub.f32 1.0, %v832_v10  ;;  %v1209_v27 = vcvt.f32.s32 %v1709_v22  ;;  %v924_v38 = vadd.f32 %v1238_v46, %v1236_v37  ;;  %v1240_v48 = vpop.eup %1239  ;;  %v935_v44 = vadd.f32 1.0, %v1709_v22 }
  0xbb   :  { %v834_v12 = vmul.f32 %v1234_v52, %v833_v63  ;;  %v950_v45 = vadd.s32 1, %v1209_v27  ;;  %v938_v50 = vperm.slane %v1209_v27, 0  ;;  %v925_v53 = vrot.slane %v924_v38, 4 }
  0xbc   :  { %v994_v60 = vperm.slane %v1209_v27, 1 }
  0xbd   :  { %v835_v24 = vadd.f32 %v1234_v52, %v834_v12  ;;  %vm939_vm4 = vcmp.eq.s32.totalorder %v1721_v23, %v938_v50  ;;  %vm940_vm5 = vcmp.eq.s32.totalorder %v1725_v49, %v938_v50  ;;  %v926_v10 = vadd.f32 %v925_v53, %v924_v38 }
  0xbe   :  { %v941_v21 = vsel %vm939_vm4, %v1638_v58, 0.0  ;;  %v942_v31 = vsel %vm940_vm5, %v1640_v61, 0.0  ;;  %v1006_v41 = vperm.slane %v950_v45, 1  ;;  %vm995_vm8 = vcmp.eq.s32.totalorder %v1721_v23, %v994_v60 }
  0xbf   :  { %v839_v26 = vsel %vm1699_vm2, %v1234_v52, %v835_v24  ;;  %v1242_v52 = vpop.eup %1241  ;;  %v943_v57 = vadd.f32 %v942_v31, %v941_v21  ;;  %v927_v63 = vrot.slane %v926_v10, 2  ;;  %vm996_vm9 = vcmp.eq.s32.totalorder %v1725_v49, %v994_v60 }
  0xc0   :  { %v844_v32 = vsel %vm841_vm3, %v843_v51, %v839_v26  ;;  %v984_v62 = vadd.f32 %v1242_v52, %v1240_v48  ;;  %v1244_v8 = vpop.eup %1243  ;;  %vm1742_vm10 = vcmp.eq.s32.totalorder %v1721_v23, %v1006_v41  ;;  %vm1008_vm11 = vcmp.eq.s32.totalorder %v1725_v49, %v1006_v41 }
  0xc1   :  { %v845_v1 = vmul.f32 %v844_v32, %v1633_v9  ;;  %v951_v9 = vperm.slane %v950_v45, 0  ;;  %v944_v11 = vrot.slane %v943_v57, 4  ;;  %v928_v51 = vadd.f32 %v927_v63, %v926_v10 }
  0xc2   :  { %v985_v0 = vrot.slane %v984_v62, 4  ;;  %v1010_v33 = vsel %vm1008_vm11, %v1648_v5, 0.0  ;;  %v1753_v50 = vmax.f32 %v1715_v30, %v1093_v2  ;;  %v905_v52 = vmin.f32 %v1727_v42, 14.99 }
  0xc3   :  { %v846_v47 = vadd.f32 1e-07, %v845_v1  ;;  %vm952_vm6 = vcmp.eq.s32.totalorder %v1721_v23, %v951_v9  ;;  %vm953_vm7 = vcmp.eq.s32.totalorder %v1725_v49, %v951_v9  ;;  %v945_v15 = vadd.f32 %v944_v11, %v943_v57 }
  0xc4   :  { %v954_v56 = vsel %vm952_vm6, %v1638_v58, 0.0  ;;  %v955_v40 = vsel %vm953_vm7, %v1640_v61, 0.0  ;;  %v997_v58 = vsel %vm995_vm8, %v1646_v3, 0.0  ;;  %v998_v61 = vsel %vm996_vm9, %v1648_v5, 0.0 }
  0xc5   :  { %1245 = vlog2.f32 %v846_v47  ;;  %v956_v6 = vadd.f32 %v955_v40, %v954_v56  ;;  %v986_v17 = vadd.f32 %v985_v0, %v984_v62  ;;  %v999_v34 = vadd.f32 %v998_v61, %v997_v58 }
  0xc6   :  { %1247 = vpow2.f32 %v1039_v55  ;;  %v929_v24 = vrot.slane %v928_v51, 1  ;;  %v946_v28 = vrot.slane %v945_v15, 2  ;;  %v1009_v1 = vsel %vm1742_vm10, %v1646_v3, 0.0 }
  0xc7   :  { %v957_v4 = vrot.slane %v956_v6, 4  ;;  %v987_v32 = vrot.slane %v986_v17, 2  ;;  %v1000_v35 = vrot.slane %v999_v34, 4  ;;  %v1011_v48 = vadd.f32 %v1010_v33, %v1009_v1 }
  0xc8   :  { %v947_v46 = vadd.f32 %v946_v28, %v945_v15  ;;  %v930_v53 = vadd.f32 %v929_v24, %v928_v51  ;;  %v1758_v3 = vsub.f32 %v935_v44, %v901_v14  ;;  %v1095_v30 = vsub.f32 %v1668_v39, %v1753_v50 }
  0xc9   :  { %v958_v54 = vadd.f32 %v957_v4, %v956_v6  ;;  %v988_v45 = vadd.f32 %v987_v32, %v986_v17  ;;  %v1001_v38 = vadd.f32 %v1000_v35, %v999_v34  ;;  %v1096_v2 = vsub.f32 %v1670_v16, %v1753_v50 }
  0xca   :  { %v948_v55 = vrot.slane %v947_v46, 1  ;;  %1249 = vlog2.f32 %v930_v53  ;;  %v1051_v7 = vfloor.f32 %v905_v52  ;;  %v965_v14 = vsub.f32 1.0, %v1758_v3 }
  0xcb   :  { %v1246_v12 = vpop.eup %1245  ;;  %v959_v37 = vrot.slane %v958_v54, 2  ;;  %v989_v5 = vrot.slane %v988_v45, 1  ;;  %v1002_v31 = vrot.slane %v1001_v38, 2  ;;  %v1097_v51 = vmul.f32 1.442695, %v1095_v30 }
  0xcc   :  { %v848_v13 = vmul.f32 0.6931472, %v1246_v12  ;;  %v1248_v27 = vpop.eup %1247  ;;  %v949_v62 = vadd.f32 %v948_v55, %v947_v46  ;;  %v1211_v0 = vcvt.f32.s32 %v1051_v7  ;;  %vm882_vm7 = vcmask 1040384  }
  0xcd   :  { %v960_v47 = vadd.f32 %v959_v37, %v958_v54  ;;  %v1041_v22 = vadd.f32 %v1248_v27, %v1244_v8  ;;  %v990_v60 = vadd.f32 %v989_v5, %v988_v45  ;;  %v1003_v11 = vadd.f32 %v1002_v31, %v1001_v38 }
  0xce   :  { %v849_v26 = vmul.f32 0.5, %v848_v13  ;;  %v964_v58 = vmul.f32 %v949_v62, %v1758_v3  ;;  %v1055_v61 = vperm.slane %v1211_v0, 0  ;;  %v1067_v13 = vadd.s32 1, %v1211_v0 }
  0xcf   :  { %v961_v21 = vrot.slane %v960_v47, 1  ;;  %v1042_v57 = vrot.slane %v1041_v22, 4  ;;  %v1004_v34 = vrot.slane %v1003_v11, 1  ;;  %v1099_v54 = vmul.f32 1.442695, %v1096_v2 }
  0xd0   :  { %v851_v43 = vadd.f32 %v850_v36, %v849_v26  ;;  %v1012_v36 = vrot.slane %v1011_v48, 4  ;;  %v1250_v15 = vpop.eup %1249  ;;  %vm1056_vm12 = vcmp.eq.s32.totalorder %v1721_v23, %v1055_v61  ;;  %vm1057_vm13 = vcmp.eq.s32.totalorder %v1725_v49, %v1055_v61 }
  0xd1   :  { %v1043_v6 = vadd.f32 %v1042_v57, %v1041_v22  ;;  %v962_v8 = vadd.f32 %v961_v21, %v960_v47  ;;  %v1058_v28 = vsel %vm1056_vm12, %v1656_v18, 0.0  ;;  %v1059_v32 = vsel %vm1057_vm13, %v1658_v19, 0.0 }
  0xd2   :  { %v852_v9 = vmax.f32 %v851_v43, 1e-07  ;;  %v1013_v56 = vadd.f32 %v1012_v36, %v1011_v48  ;;  %v1068_v35 = vperm.slane %v1067_v13, 0  ;;  %v932_v27 = vmul.f32 0.6931472, %v1250_v15 }
  0xd3   :  { %v1044_v4 = vrot.slane %v1043_v6, 2  ;;  %v966_v17 = vmul.f32 %v965_v14, %v962_v8  ;;  %v1060_v37 = vadd.f32 %v1059_v32, %v1058_v28  ;;  %v1005_v45 = vadd.f32 %v1004_v34, %v1003_v11 }
  0xd4   :  { %v853_v10 = vmin.f32 %v852_v9, 100.0  ;;  %v1014_v63 = vrot.slane %v1013_v56, 2  ;;  %vm1773_vm14 = vcmp.eq.s32.totalorder %v1721_v23, %v1068_v35  ;;  %vm1070_vm15 = vcmp.eq.s32.totalorder %v1725_v49, %v1068_v35 }
  0xd5   :  { %v1045_v24 = vadd.f32 %v1044_v4, %v1043_v6  ;;  %v967_v33 = vadd.f32 %v966_v17, %v964_v58  ;;  %v1061_v38 = vrot.slane %v1060_v37, 4  ;;  %v1071_v9 = vsel %vm1773_vm14, %v1656_v18, 0.0 }
  0xd6   :  { %v854_v40 = vsub.f32 0.0, %v853_v10  ;;  %v1015_v12 = vadd.f32 %v1014_v63, %v1013_v56  ;;  %v1072_v53 = vsel %vm1070_vm15, %v1658_v19, 0.0  ;;  %v1111_v55 = vperm.slane %v1211_v0, 1 }
  0xd7   :  { %v1046_v26 = vrot.slane %v1045_v24, 1  ;;  %v933_v22 = vadd.f32 %v932_v27, %v1675_v29  ;;  %v1062_v10 = vadd.f32 %v1061_v38, %v1060_v37  ;;  %v1073_v21 = vadd.f32 %v1072_v53, %v1071_v9 }
  0xd8   :  { %v855_v41 = vmul.f32 1.442695, %v854_v40  ;;  %v1016_v59 = vrot.slane %v1015_v12, 1  ;;  %v1052_v31 = vadd.f32 1.0, %v1051_v7  ;;  %vm1786_vm0 = vcmp.eq.s32.totalorder %v1721_v23, %v1111_v55 }
  0xd9   :  { %v1047_v48 = vadd.f32 %v1046_v26, %v1045_v24  ;;  %vm1791_vm1 = vcmp.eq.s32.totalorder %v1725_v49, %v1111_v55  ;;  %v1123_v18 = vperm.slane %v1067_v13, 1  ;;  %v1019_v30 = vmul.f32 %v1005_v45, %v1758_v3 }
  0xda   :  { %1251 = vpow2.f32 %v855_v41  ;;  %v1017_v47 = vadd.f32 %v1016_v59, %v1015_v12  ;;  %v1063_v40 = vrot.slane %v1062_v10, 2  ;;  %v1074_v62 = vrot.slane %v1073_v21, 4 }
  0xdb   :  { %1253 = vlog2.f32 %v990_v60  ;;  %v1114_v7 = vsel %vm1786_vm0, %v1668_v39, 0.0  ;;  %v1115_v63 = vsel %vm1791_vm1, %v1670_v16, 0.0  ;;  %vm1124_vm2 = vcmp.eq.s32.totalorder %v1721_v23, %v1123_v18 }
  0xdc   :  { %1255 = vpow2.f32 %v1097_v51  ;;  %v1020_v29 = vmul.f32 %v1017_v47, %v965_v14  ;;  %vm1125_vm3 = vcmp.eq.s32.totalorder %v1725_v49, %v1123_v18  ;;  %v1064_v6 = vadd.f32 %v1063_v40, %v1062_v10 }
  0xdd   :  { %1257 = vpow2.f32 %v1099_v54  ;;  %v1075_v3 = vadd.f32 %v1074_v62, %v1073_v21  ;;  %v1116_v14 = vadd.f32 %v1115_v63, %v1114_v7  ;;  %v1126_v41 = vsel %vm1124_vm2, %v1668_v39, 0.0 }
  0xde   :  { %v968_v8 = vsub.f32 %v933_v22, %v967_v33  ;;  %v1053_v11 = vsub.f32 %v1052_v31, %v905_v52  ;;  %v1127_v12 = vsel %vm1125_vm3, %v1670_v16, 0.0  ;;  %v1021_v13 = vadd.f32 %v1020_v29, %v1019_v30 }
  0xdf   :  { %v1076_v4 = vrot.slane %v1075_v3, 2  ;;  %v1117_v58 = vrot.slane %v1116_v14, 4  ;;  %v1128_v61 = vadd.f32 %v1127_v12, %v1126_v41  ;;  %v1065_v34 = vrot.slane %v1064_v6, 1 }
  0xe0   :  { %v1252_v1 = vpop.eup %1251  ;;  %v1082_v54 = vsub.f32 1.0, %v1053_v11 }
  0xe1   :  { %v1254_v44 = vpop.eup %1253  ;;  %v857_v46 = vsub.f32 1.0, %v1252_v1  ;;  %v1077_v39 = vadd.f32 %v1076_v4, %v1075_v3  ;;  %v1118_v24 = vadd.f32 %v1117_v58, %v1116_v14  ;;  %v1129_v52 = vrot.slane %v1128_v61, 4  ;;  %v67_v3 = vld [vmem:[%s1834_s4] sm:$0x1] }
  0xe2   :  { %v1256_v5 = vpop.eup %1255  ;;  %v992_v19 = vmul.f32 0.6931472, %v1254_v44  ;;  %v1066_v1 = vadd.f32 %v1065_v34, %v1064_v6  ;;  %vm871_vm6 = vcmp.gt.f32.partialorder %v67_v3, 0.0 }
  0xe3   :  { %v1782_v36 = vadd.f32 1e-07, %v857_v46  ;;  %v1258_v2 = vpop.eup %1257  ;;  %v1078_v16 = vrot.slane %v1077_v39, 1  ;;  %v1119_v28 = vrot.slane %v1118_v24, 2  ;;  %v1130_v27 = vadd.f32 %v1129_v52, %v1128_v61 }
  0xe4   :  { %v1101_v60 = vadd.f32 %v1258_v2, %v1256_v5  ;;  %v993_v51 = vadd.f32 %v992_v19, %v1689_v20  ;;  %v1023_v20 = vrot.slane %v1021_v13, 1  ;;  %v1081_v5 = vmul.f32 %v1066_v1, %v1053_v11 }
  0xe5   :  { %1259 = vrsqrt.f32 %v1782_v36  ;;  %v1079_v33 = vadd.f32 %v1078_v16, %v1077_v39  ;;  %v1120_v43 = vadd.f32 %v1119_v28, %v1118_v24  ;;  %v1131_v46 = vrot.slane %v1130_v27, 2 }
  0xe6   :  { %1261 = vlog2.f32 %v1047_v48  ;;  %v1102_v0 = vrot.slane %v1101_v60, 4  ;;  %v1018_v26 = vadd.f32 %v993_v51, %v968_v8  ;;  %vm866_vm4 = vcmp.eq.f32.partialorder %v1782_v36, inf }
  0xe7   :  { %v1121_v47 = vrot.slane %v1120_v43, 1  ;;  %v1132_v53 = vadd.f32 %v1131_v46, %v1130_v27  ;;  %v1083_v22 = vmul.f32 %v1082_v54, %v1079_v33  ;;  %v869_v21 = vand.u32 2147483648, %v1782_v36 }
  0xe8   :  { %v1103_v49 = vadd.f32 %v1102_v0, %v1101_v60  ;;  %v1025_v38 = vsub.f32 %v1018_v26, %v1023_v20  ;;  %vm868_vm5 = vcmp.eq.f32.partialorder %v1782_v36, 0.0 }
  0xe9   :  { %v1122_v10 = vadd.f32 %v1121_v47, %v1120_v43  ;;  %v1133_v31 = vrot.slane %v1132_v53, 1  ;;  %v1084_v29 = vadd.f32 %v1083_v22, %v1081_v5 }
  0xea   :  { %v1104_v42 = vrot.slane %v1103_v49, 2 }
  0xeb   :  { %v1260_v23 = vpop.eup %1259  ;;  %v1134_v57 = vadd.f32 %v1133_v31, %v1132_v53  ;;  %v1136_v18 = vmul.f32 %v1122_v10, %v1053_v11 }
  0xec   :  { %v1262_v15 = vpop.eup %1261  ;;  %v860_v17 = vmul.f32 %v1260_v23, %v1782_v36  ;;  %v1105_v35 = vadd.f32 %v1104_v42, %v1103_v49 }
  0xed   :  { %v1049_v32 = vmul.f32 0.6931472, %v1262_v15  ;;  %v1137_v40 = vmul.f32 %v1134_v57, %v1082_v54 }
  0xee   :  { %v861_v59 = vmul.f32 %v1260_v23, %v860_v17  ;;  %v1106_v44 = vrot.slane %v1105_v35, 1 }
  0xef   :  { %v1050_v48 = vadd.f32 %v1049_v32, %v1704_v25  ;;  %v1228_v25 = vld [vmem:[%s1834_s4] ss:$0 sm:$0xff]  ;;  %v1138_v60 = vadd.f32 %v1137_v40, %v1136_v18  ;;  %s1405_s4 = smov [#allocation8]  }
  0xf0   :  { %v862_v37 = vmul.f32 0.5, %v861_v59  ;;  %v1107_v9 = vadd.f32 %v1106_v44, %v1105_v35  ;;  %s1165_s16 = sshll.u32 %s1405_s4, 4  ;;  %s1166_s16 = int_to_ptr.vmem [resolvable:$true] %s1165_s16 }
  0xf1   :  { %v1080_v30 = vadd.f32 %v1050_v48, %v1025_v38  ;;  %v1140_v41 = vrot.slane %v1138_v60, 1 }
  0xf2   :  { %v863_v45 = vsub.f32 1.5, %v862_v37  ;;  %1263 = vlog2.f32 %v1107_v9 }
  0xf3   :  { %v1085_v63 = vsub.f32 %v1080_v30, %v1084_v29 }
  0xf4   :  { %v864_v55 = vmul.f32 %v1260_v23, %v863_v45 }
  0xf6   :  { %v865_v56 = vmul.f32 %v864_v55, %v1782_v36 }
  0xf8   :  { %v867_v19 = vsel %vm866_vm4, %v1782_v36, %v865_v56  ;;  %v1264_v7 = vpop.eup %1263 }
  0xf9   :  { %v870_v2 = vsel %vm868_vm5, %v869_v21, %v867_v19  ;;  %v1109_v6 = vmul.f32 0.6931472, %v1264_v7 }
  0xfa   :  { %v875_v62 = vmul.f32 %v1228_v25, %v870_v2 }
  0xfb   :  { %v1110_v14 = vadd.f32 %v1109_v6, %v1753_v50 }
  0xfc   :  { %877 = vst [vmem:[#allocation1] sm:$0xff] %v875_v62 }
  0xfd   :  { %v1135_v8 = vadd.f32 %v1110_v14, %v1085_v63 }
  0xff   :  { %v1142_v36 = vsub.f32 %v1135_v8, %v1140_v41 }
 0x101   :  { %v1143_v12 = vmul.f32 0.25, %v1142_v36 }
 0x103   :  { %v879_v11 = vld [vmem:[#allocation1 + $0x2] ss:$9 sm:$0xff]  ;;  %v1144_v4 = vmul.f32 %v1143_v12, %v67_v3 }
 0x104   :  { %v881_v0 = vsel %vm871_vm6, %v879_v11, 0.0 }
 0x105   :  { %v883_v51 = vsel %vm882_vm7, %v881_v0, 0.0  ;;  %v1145_v58 = vsel %vm871_vm6, %v1144_v4, 0.0 }
 0x106   :  { %884 = vadd.xlane.f32.xlu0 %v883_v51  ;;  %v1146_v61 = vsel %vm882_vm7, %v1145_v58, 0.0 }
 0x10e   :  { %1147 = vadd.xlane.f32.xlu0 %v1146_v61 }
 0x179   :  { %v885_v23 = vpop.xlane.xlu0 %884 }
 0x17a   :  { %v886_v13 = vrot.slane %v885_v23, 4 }
 0x17c   :  { %v887_v49 = vadd.f32 %v886_v13, %v885_v23 }
 0x17e   :  { %v888_v15 = vrot.slane %v887_v49, 2 }
 0x180   :  { %v889_v17 = vadd.f32 %v888_v15, %v887_v49 }
 0x181   :  { %v1148_v50 = vpop.xlane.xlu0 %1147 }
 0x182   :  { %v890_v34 = vrot.slane %v889_v17, 1  ;;  %v1149_v39 = vrot.slane %v1148_v50, 4 }
 0x184   :  { %v891_v24 = vadd.f32 %v890_v34, %v889_v17  ;;  %v1150_v54 = vadd.f32 %v1149_v39, %v1148_v50 }
 0x186   :  { %1206 = vpush %v891_v24  ;;  %v1151_v42 = vrot.slane %v1150_v54, 2 }
 0x188   :  { %v1152_v52 = vadd.f32 %v1151_v42, %v1150_v54 }
 0x18a   :  { %v1153_v59 = vrot.slane %v1152_v52, 1 }
 0x18c   :  { %v1154_v26 = vadd.f32 %v1153_v59, %v1152_v52 }
 0x18e   :  { %1212 = vpush %v1154_v26 }
 0x1b7   :  { %s1207_s20 = spop %1206 }
 0x1b8   :  { %v1156_v16 = vstv %s1207_s20 }
 0x1b9   :  { %1157 = vst [vmem:[#allocation8] sm:$0xff] %v1156_v16 }
 0x1ba   :  { %1170 = dma.vmem_to_hbm [thread:$0]  %s1166_s16, 128, %s1168_s19, [#allocation4]  }
 0x1bf   :  { %s1213_s26 = spop %1212 }
 0x1c0   :  { %v1158_v28 = vstv %s1213_s26 }
 0x1c1   :  { %1159 = vst [vmem:[#allocation9] sm:$0xff] %v1158_v28 }
 0x1c2   :  { %1181 = dma.vmem_to_hbm [thread:$0]  %s1177_s22, 128, %s1179_s25, [#allocation10]  }
 0x1c3   :  { %1389 = dma.done.wait [#allocation4], 128  }
 0x1c4   :  { %1390 = vsyncadd [#allocation4], 4294967168 }
 0x1c5   :  { %1391 = dma.done.wait [#allocation10], 128  }
 0x1c6   :  { %1392 = vsyncadd [#allocation10], 4294967168 }
 0x1c7   :  { %1190 = vsyncpa [#allocation3], 1 }
 0x1c8   :  { %1191 = vsyncpa [#allocation6], 1 }
 0x1c9   :  { %1192 = vsyncpa [#allocation4], 1 }
 0x1ca   :  { %1193 = vsyncpa [#allocation10], 1 }

</bundles_post_ra>
